<compile_context>
chip_gen: v5e
topology: v5e:2x2
jax: 0.10.0
libtpu: 0.0.40
codegen_flags: <defaults>
</compile_context>

<pallas_src>
import functools

import jax
import jax.numpy as jnp
import numpy as np
from jax import lax
from jax.experimental import pallas as pl
from jax.experimental.pallas import tpu as pltpu

LANE = 128          # TPU lane width; every feature dim is padded to a multiple
BIG = 1e30          # effective ||e||^2 for padded codebook rows (never chosen)


def _round_up(n, m):
    return ((n + m - 1) // m) * m


def _pad_to(a, shape):
    return jnp.pad(a, [(0, s - d) for d, s in zip(a.shape, shape)])


def _activate(h, activation):
    if activation == "relu":
        return jnp.maximum(h, 0.0)
    if activation == "tanh":
        return jnp.tanh(h)
    if activation == "sigmoid":
        return jax.nn.sigmoid(h)
    raise ValueError(f"Unsupported activation function: {activation}")


# ----------------------------- Pallas kernel --------------------------------
def _vqvae_kernel(batch_size, k_pad, activation,
                  x_ref,
                  we0_ref, be0_ref, we1_ref, be1_ref, we2_ref, be2_ref,
                  cb_ref, cbt_ref, cbsq_ref,
                  wd0_ref, bd0_ref, wd1_ref, bd1_ref, wd2_ref, bd2_ref,
                  out_ref, loss_ref):
    f32 = jnp.float32
    x = x_ref[...]                                  # (TB, D_pad)
    tb = x.shape[0]

    # -------- encoder: Linear+act, Linear+act, Linear -> E_pad ---------------
    h = _activate(jnp.dot(x, we0_ref[...], preferred_element_type=f32)
                  + be0_ref[...], activation)
    h = _activate(jnp.dot(h, we1_ref[...], preferred_element_type=f32)
                  + be1_ref[...], activation)
    z = jnp.dot(h, we2_ref[...], preferred_element_type=f32) + be2_ref[...]   # (TB, E_pad)

    # -------- vector quantizer ----------------------------------------------
    # cbt_ref is the pre-transposed (E_pad, K_pad) codebook -> no in-kernel .T
    # cbsq_ref is the precomputed (1, K_pad) ||e||^2 row (BIG for padded rows).
    z_sq = jnp.sum(z * z, axis=-1, keepdims=True)                             # (TB, 1)
    cross = jnp.dot(z, cbt_ref[...], preferred_element_type=f32)              # (TB, K_pad)
    dists = z_sq - 2.0 * cross + cbsq_ref[...]                                # (TB, K_pad)

    # argmin with first-occurrence tie-break via min/where/iota, then one-hot
    # gather on the MXU.
    k_iota = lax.broadcasted_iota(jnp.int32, dists.shape, 1)
    d_min = jnp.min(dists, axis=-1, keepdims=True)
    idx = jnp.min(jnp.where(dists == d_min, k_iota, k_pad),
                  axis=-1, keepdims=True)                                     # (TB, 1)
    one_hot = (k_iota == idx).astype(f32)                                     # (TB, K_pad)
    z_q = jnp.dot(one_hot, cb_ref[...], preferred_element_type=f32)           # (TB, E_pad)

    # -------- per-tile partial sum of squared error --------------------------
    # Mask out batch-padding rows of this tile; padded E columns are exactly 0
    # in both z and z_q, so they contribute nothing.
    row_idx = pl.program_id(0) * tb + lax.broadcasted_iota(jnp.int32, (tb, 1), 0)
    row_mask = (row_idx < batch_size).astype(f32)                             # (TB, 1)
    diff = (z_q - z) * row_mask
    sq = diff * diff
    # two-stage reduction: sublane reduce on the MXU, lane reduce on one vreg.
    col_sums = jnp.dot(jnp.ones((1, tb), f32), sq,
                       preferred_element_type=f32)                            # (1, E_pad)
    partial = jnp.sum(col_sums)
    loss_ref[...] = jnp.full(loss_ref.shape, partial, dtype=f32)              # lane-dense

    # -------- decoder (straight-through: forward input is z_q) ---------------
    h = _activate(jnp.dot(z_q, wd0_ref[...], preferred_element_type=f32)
                  + bd0_ref[...], activation)
    h = _activate(jnp.dot(h, wd1_ref[...], preferred_element_type=f32)
                  + bd1_ref[...], activation)
    out_ref[...] = (jnp.dot(h, wd2_ref[...], preferred_element_type=f32)
                    + bd2_ref[...])


# ------------------------------ wrapper --------------------------------------
@functools.partial(jax.jit,
                   static_argnames=("commitment_cost", "activation", "tile_b"))
def vqvae_forward(x, params, *, commitment_cost, activation="relu", tile_b=128):
    """Fused VQ-VAE forward.  params is the flat tuple of 13 unpadded arrays."""
    (we0, be0, we1, be1, we2, be2, cb,
     wd0, bd0, wd1, bd1, wd2, bd2) = params
    f32 = jnp.float32
    B, D_in = x.shape
    K, E = cb.shape
    D_out = wd2.shape[1]                 # = embedding_dim per reverse=True build

    # --- pad every feature dim to a lane-dense multiple of 128 ----------------
    # (Zero padding keeps the math exact; padded codebook rows get BIG ||e||^2
    #  so they are never selected.  In a real pipeline this padding would be
    #  done once at parameter-load time; here it is jitted and fuses with the
    #  rest of the graph.)
    rnd = lambda n: _round_up(n, LANE)
    D_p = rnd(D_in)
    H0e_p, H1e_p = rnd(we0.shape[1]), rnd(we1.shape[1])
    E_p, K_p = rnd(E), rnd(K)
    H0d_p, H1d_p = rnd(wd0.shape[1]), rnd(wd1.shape[1])
    Do_p = rnd(D_out)

    TB = tile_b
    B_p = _round_up(B, TB)
    num_tiles = B_p // TB

    x_p = _pad_to(x.astype(f32), (B_p, D_p))
    we0_p, be0_p = _pad_to(we0, (D_p, H0e_p)), _pad_to(be0, (1, H0e_p))
    we1_p, be1_p = _pad_to(we1, (H0e_p, H1e_p)), _pad_to(be1, (1, H1e_p))
    we2_p, be2_p = _pad_to(we2, (H1e_p, E_p)), _pad_to(be2, (1, E_p))
    cb_p = _pad_to(cb, (K_p, E_p))
    cbt_p = cb_p.T                                              # (E_p, K_p)
    cb_sq = jnp.sum(cb * cb, axis=-1)                           # hoisted out of kernel
    cbsq_p = jnp.pad(cb_sq, (0, K_p - K), constant_values=BIG)[None, :]   # (1, K_p)
    wd0_p, bd0_p = _pad_to(wd0, (E_p, H0d_p)), _pad_to(bd0, (1, H0d_p))
    wd1_p, bd1_p = _pad_to(wd1, (H0d_p, H1d_p)), _pad_to(bd1, (1, H1d_p))
    wd2_p, bd2_p = _pad_to(wd2, (H1d_p, Do_p)), _pad_to(bd2, (1, Do_p))

    inputs = (x_p, we0_p, be0_p, we1_p, be1_p, we2_p, be2_p,
              cb_p, cbt_p, cbsq_p, wd0_p, bd0_p, wd1_p, bd1_p, wd2_p, bd2_p)

    # weights / codebook: full-array blocks with a constant index_map so Pallas
    # keeps them VMEM-resident across grid steps (no re-DMA).
    def resident(a):
        return pl.BlockSpec(a.shape, lambda i: (0,) * a.ndim)

    in_specs = [pl.BlockSpec((TB, D_p), lambda i: (i, 0))]      # x: tiled over batch
    in_specs += [resident(a) for a in inputs[1:]]

    out_specs = (
        pl.BlockSpec((TB, Do_p), lambda i: (i, 0)),             # x_rec (lane-dense)
        pl.BlockSpec((1, 8, LANE), lambda i: (i, 0, 0)),        # per-tile SSE partials
    )
    out_shape = (
        jax.ShapeDtypeStruct((B_p, Do_p), f32),
        jax.ShapeDtypeStruct((num_tiles, 8, LANE), f32),
    )

    # advisory cost estimate so XLA schedules neighbouring ops sensibly
    flops = 2 * B_p * (D_p * H0e_p + H0e_p * H1e_p + H1e_p * E_p
                       + E_p * K_p + K_p * E_p
                       + E_p * H0d_p + H0d_p * H1d_p + H1d_p * Do_p)
    transcendentals = 0 if activation == "relu" else \
        B_p * (H0e_p + H1e_p + H0d_p + H1d_p)
    param_bytes = (D_p * H0e_p + H0e_p * H1e_p + H1e_p * E_p
                   + 2 * K_p * E_p + K_p
                   + E_p * H0d_p + H0d_p * H1d_p + H1d_p * Do_p
                   + H0e_p + H1e_p + E_p + H0d_p + H1d_p + Do_p) * 4
    bytes_accessed = param_bytes + (B_p * (D_p + Do_p)
                                    + num_tiles * 8 * LANE) * 4

    kernel = functools.partial(_vqvae_kernel, B, K_p, activation)
    x_rec_p, loss_parts = pl.pallas_call(
        kernel,
        grid=(num_tiles,),
        in_specs=in_specs,
        out_specs=out_specs,
        out_shape=out_shape,
        compiler_params=pltpu.CompilerParams(
            dimension_semantics=("parallel",)),   # v7x: shard batch tiles over 2 TCs
        cost_estimate=pl.CostEstimate(flops=int(flops),
                                      transcendentals=int(transcendentals),
                                      bytes_accessed=int(bytes_accessed)),
    )(*inputs)

    x_rec = x_rec_p[:B, :D_out]
    sse = jnp.sum(loss_parts[:, 0, 0])                          # finish mean in wrapper
    vq_loss = (1.0 + commitment_cost) * sse / (B * E)
    return x_rec, vq_loss


# ---------------------- deterministic parameter init ------------------------
def _linear_params(key, in_dim, out_dim):
    """PyTorch-style uniform(-1/sqrt(in), 1/sqrt(in)); W stored (in, out)."""
    kw, kb = jax.random.split(key)
    bound = 1.0 / np.sqrt(in_dim)
    w = jax.random.uniform(kw, (in_dim, out_dim), jnp.float32, -bound, bound)
    b = jax.random.uniform(kb, (1, out_dim), jnp.float32, -bound, bound)
    return w, b


def init_vqvae_params(key, input_dim, encoder_layers, decoder_layers,
                      embedding_dim, num_embeddings):
    keys = jax.random.split(key, 8)
    # encoder: D_in -> enc[0] -> enc[1] -> E
    we0, be0 = _linear_params(keys[0], input_dim, encoder_layers[0])
    we1, be1 = _linear_params(keys[1], encoder_layers[0], encoder_layers[1])
    we2, be2 = _linear_params(keys[2], encoder_layers[1], embedding_dim)
    # codebook: nn.Embedding-style N(0,1) init (also keeps nearest-code
    # decisions numerically well separated for the correctness check).
    cb = jax.random.normal(keys[3], (num_embeddings, embedding_dim), jnp.float32)
    # decoder: E -> dec[0] -> dec[1] -> E   (build_network(embedding_dim, ...,
    # reverse=True) maps the final Linear back to embedding_dim).
    wd0, bd0 = _linear_params(keys[4], embedding_dim, decoder_layers[0])
    wd1, bd1 = _linear_params(keys[5], decoder_layers[0], decoder_layers[1])
    wd2, bd2 = _linear_params(keys[6], decoder_layers[1], embedding_dim)
    return (we0, be0, we1, be1, we2, be2, cb,
            wd0, bd0, wd1, bd1, wd2, bd2)


# ---------------------------- pure-JAX reference ------------------------------
def vqvae_reference(x, params, *, commitment_cost, activation="relu"):
    (we0, be0, we1, be1, we2, be2, cb,
     wd0, bd0, wd1, bd1, wd2, bd2) = params
    act = lambda h: _activate(h, activation)
    h = act(x @ we0 + be0)
    h = act(h @ we1 + be1)
    z = h @ we2 + be2
    d = (jnp.sum(z * z, -1, keepdims=True) - 2.0 * (z @ cb.T)
         + jnp.sum(cb * cb, -1)[None, :])
    idx = jnp.argmin(d, axis=-1)
    d_sorted = jnp.sort(d, axis=-1)
    gap = d_sorted[:, 1] - d_sorted[:, 0]     # nearest-vs-second-nearest margin
    z_q = cb[idx]
    mse = jnp.mean((z_q - z) ** 2)
    vq_loss = (1.0 + commitment_cost) * mse
    h = act(z_q @ wd0 + bd0)
    h = act(h @ wd1 + bd1)
    x_rec = h @ wd2 + bd2
    return x_rec, vq_loss, gap


# --------------------------------- main --------------------------------------
if __name__ == "__main__":
    # small config consistent with the module's __init__; batch chosen to span
    # two 128-row tiles (exercises pipelining, per-tile loss partials and the
    # padded-row masking path).
    batch = 200
    input_dim = 32
    encoder_layers = [64, 64]
    decoder_layers = [64, 64]
    embedding_dim = 32
    num_embeddings = 64
    commitment_cost = 0.25
    activation = "relu"

    key = jax.random.PRNGKey(0)
    k_x, k_p = jax.random.split(key)
    x = jax.random.normal(k_x, (batch, input_dim), jnp.float32)
    params = init_vqvae_params(k_p, input_dim, encoder_layers, decoder_layers,
                               embedding_dim, num_embeddings)

    x_rec, vq_loss = vqvae_forward(x, params,
                                   commitment_cost=commitment_cost,
                                   activation=activation,
                                   tile_b=128)
    jax.block_until_ready((x_rec, vq_loss))

    # correctness check against a pure-JAX reference.  Rows whose nearest-code
    # margin is tiny could legitimately pick a different (near-tied) code under
    # f32 rounding differences, so the element-wise check skips them; the loss
    # check covers everything (a near-tie changes the mse only negligibly).
    x_rec_ref, vq_loss_ref, gap = vqvae_reference(
        x, params, commitment_cost=commitment_cost, activation=activation)
    confident = np.asarray(gap) > 1e-2
    assert confident.mean() > 0.9, "too many near-tied codebook assignments"
    np.testing.assert_allclose(np.asarray(x_rec)[confident],
                               np.asarray(x_rec_ref)[confident],
                               rtol=1e-4, atol=1e-4)
    np.testing.assert_allclose(float(vq_loss), float(vq_loss_ref),
                               rtol=1e-4, atol=1e-6)

    print("KERNEL_OK")
</pallas_src>

<mosaic_0001>
module attributes {stable_mosaic.version = 11 : i64} {
  func.func @_vqvae_kernel(%arg0: i32, %arg1: memref<128x128xf32, #tpu.memory_space<vmem>>, %arg2: memref<128x128xf32, #tpu.memory_space<vmem>>, %arg3: memref<1x128xf32, #tpu.memory_space<vmem>>, %arg4: memref<128x128xf32, #tpu.memory_space<vmem>>, %arg5: memref<1x128xf32, #tpu.memory_space<vmem>>, %arg6: memref<128x128xf32, #tpu.memory_space<vmem>>, %arg7: memref<1x128xf32, #tpu.memory_space<vmem>>, %arg8: memref<128x128xf32, #tpu.memory_space<vmem>>, %arg9: memref<128x128xf32, #tpu.memory_space<vmem>>, %arg10: memref<1x128xf32, #tpu.memory_space<vmem>>, %arg11: memref<128x128xf32, #tpu.memory_space<vmem>>, %arg12: memref<1x128xf32, #tpu.memory_space<vmem>>, %arg13: memref<128x128xf32, #tpu.memory_space<vmem>>, %arg14: memref<1x128xf32, #tpu.memory_space<vmem>>, %arg15: memref<128x128xf32, #tpu.memory_space<vmem>>, %arg16: memref<1x128xf32, #tpu.memory_space<vmem>>, %arg17: memref<128x128xf32, #tpu.memory_space<vmem>>, %arg18: memref<1x8x128xf32, #tpu.memory_space<vmem>>) attributes {dimension_semantics = [#tpu.dimension_semantics<parallel>], iteration_bounds = array<i64: 2>, scalar_prefetch = 0 : i64, scratch_operands = 0 : i64, tpu.core_type = #tpu.core_type<tc>, window_params = [{transform_indices = @transform_0, window_bounds = array<i64: 128, 128>}, {pipeline_mode = #tpu.pipeline_mode<synchronous>, transform_indices = @transform_1, window_bounds = array<i64: 128, 128>}, {pipeline_mode = #tpu.pipeline_mode<synchronous>, transform_indices = @transform_2, window_bounds = array<i64: 1, 128>}, {pipeline_mode = #tpu.pipeline_mode<synchronous>, transform_indices = @transform_3, window_bounds = array<i64: 128, 128>}, {pipeline_mode = #tpu.pipeline_mode<synchronous>, transform_indices = @transform_4, window_bounds = array<i64: 1, 128>}, {pipeline_mode = #tpu.pipeline_mode<synchronous>, transform_indices = @transform_5, window_bounds = array<i64: 128, 128>}, {pipeline_mode = #tpu.pipeline_mode<synchronous>, transform_indices = @transform_6, window_bounds = array<i64: 1, 128>}, {pipeline_mode = #tpu.pipeline_mode<synchronous>, transform_indices = @transform_7, window_bounds = array<i64: 128, 128>}, {pipeline_mode = #tpu.pipeline_mode<synchronous>, transform_indices = @transform_8, window_bounds = array<i64: 128, 128>}, {pipeline_mode = #tpu.pipeline_mode<synchronous>, transform_indices = @transform_9, window_bounds = array<i64: 1, 128>}, {pipeline_mode = #tpu.pipeline_mode<synchronous>, transform_indices = @transform_10, window_bounds = array<i64: 128, 128>}, {pipeline_mode = #tpu.pipeline_mode<synchronous>, transform_indices = @transform_11, window_bounds = array<i64: 1, 128>}, {pipeline_mode = #tpu.pipeline_mode<synchronous>, transform_indices = @transform_12, window_bounds = array<i64: 128, 128>}, {pipeline_mode = #tpu.pipeline_mode<synchronous>, transform_indices = @transform_13, window_bounds = array<i64: 1, 128>}, {pipeline_mode = #tpu.pipeline_mode<synchronous>, transform_indices = @transform_14, window_bounds = array<i64: 128, 128>}, {pipeline_mode = #tpu.pipeline_mode<synchronous>, transform_indices = @transform_15, window_bounds = array<i64: 1, 128>}, {transform_indices = @transform_16, window_bounds = array<i64: 128, 128>}, {transform_indices = @transform_17, window_bounds = array<i64: 1, 8, 128>}]} {
    %c0 = arith.constant 0 : index
    %c0_0 = arith.constant 0 : index
    %0 = vector.load %arg1[%c0, %c0_0] : memref<128x128xf32, #tpu.memory_space<vmem>>, vector<128x128xf32>
    %c0_1 = arith.constant 0 : index
    %c0_2 = arith.constant 0 : index
    %1 = vector.load %arg2[%c0_1, %c0_2] : memref<128x128xf32, #tpu.memory_space<vmem>>, vector<128x128xf32>
    %cst = arith.constant dense<0.000000e+00> : vector<128x128xf32>
    %2 = tpu.matmul %0, %1, %cst {dimension_numbers = #tpu.dot_dimension_numbers<[1], [0], [0], [1], [0, 0, 1, 1], [], []>} : vector<128x128xf32>, vector<128x128xf32>, vector<128x128xf32> -> vector<128x128xf32>
    %c0_3 = arith.constant 0 : index
    %c0_4 = arith.constant 0 : index
    %3 = vector.load %arg3[%c0_3, %c0_4] : memref<1x128xf32, #tpu.memory_space<vmem>>, vector<1x128xf32>
    %4 = vector.broadcast %3 : vector<1x128xf32> to vector<128x128xf32>
    %5 = arith.addf %2, %4 : vector<128x128xf32>
    %cst_5 = arith.constant 0.000000e+00 : f32
    %6 = vector.broadcast %cst_5 : f32 to vector<128x128xf32>
    %7 = arith.maximumf %5, %6 : vector<128x128xf32>
    %c0_6 = arith.constant 0 : index
    %c0_7 = arith.constant 0 : index
    %8 = vector.load %arg4[%c0_6, %c0_7] : memref<128x128xf32, #tpu.memory_space<vmem>>, vector<128x128xf32>
    %cst_8 = arith.constant dense<0.000000e+00> : vector<128x128xf32>
    %9 = tpu.matmul %7, %8, %cst_8 {dimension_numbers = #tpu.dot_dimension_numbers<[1], [0], [0], [1], [0, 0, 1, 1], [], []>} : vector<128x128xf32>, vector<128x128xf32>, vector<128x128xf32> -> vector<128x128xf32>
    %c0_9 = arith.constant 0 : index
    %c0_10 = arith.constant 0 : index
    %10 = vector.load %arg5[%c0_9, %c0_10] : memref<1x128xf32, #tpu.memory_space<vmem>>, vector<1x128xf32>
    %11 = vector.broadcast %10 : vector<1x128xf32> to vector<128x128xf32>
    %12 = arith.addf %9, %11 : vector<128x128xf32>
    %cst_11 = arith.constant 0.000000e+00 : f32
    %13 = vector.broadcast %cst_11 : f32 to vector<128x128xf32>
    %14 = arith.maximumf %12, %13 : vector<128x128xf32>
    %c0_12 = arith.constant 0 : index
    %c0_13 = arith.constant 0 : index
    %15 = vector.load %arg6[%c0_12, %c0_13] : memref<128x128xf32, #tpu.memory_space<vmem>>, vector<128x128xf32>
    %cst_14 = arith.constant dense<0.000000e+00> : vector<128x128xf32>
    %16 = tpu.matmul %14, %15, %cst_14 {dimension_numbers = #tpu.dot_dimension_numbers<[1], [0], [0], [1], [0, 0, 1, 1], [], []>} : vector<128x128xf32>, vector<128x128xf32>, vector<128x128xf32> -> vector<128x128xf32>
    %c0_15 = arith.constant 0 : index
    %c0_16 = arith.constant 0 : index
    %17 = vector.load %arg7[%c0_15, %c0_16] : memref<1x128xf32, #tpu.memory_space<vmem>>, vector<1x128xf32>
    %18 = vector.broadcast %17 : vector<1x128xf32> to vector<128x128xf32>
    %19 = arith.addf %16, %18 : vector<128x128xf32>
    %20 = arith.mulf %19, %19 : vector<128x128xf32>
    %cst_17 = arith.constant dense<0.000000e+00> : vector<128xf32>
    %21 = vector.multi_reduction <add>, %20, %cst_17 [1] : vector<128x128xf32> to vector<128xf32>
    %22 = vector.shape_cast %21 : vector<128xf32> to vector<128x1xf32>
    %c0_18 = arith.constant 0 : index
    %c0_19 = arith.constant 0 : index
    %23 = vector.load %arg9[%c0_18, %c0_19] : memref<128x128xf32, #tpu.memory_space<vmem>>, vector<128x128xf32>
    %cst_20 = arith.constant dense<0.000000e+00> : vector<128x128xf32>
    %24 = tpu.matmul %19, %23, %cst_20 {dimension_numbers = #tpu.dot_dimension_numbers<[1], [0], [0], [1], [0, 0, 1, 1], [], []>} : vector<128x128xf32>, vector<128x128xf32>, vector<128x128xf32> -> vector<128x128xf32>
    %cst_21 = arith.constant 2.000000e+00 : f32
    %25 = vector.broadcast %cst_21 : f32 to vector<128x128xf32>
    %26 = arith.mulf %25, %24 : vector<128x128xf32>
    %27 = vector.broadcast %22 : vector<128x1xf32> to vector<128x128xf32>
    %28 = arith.subf %27, %26 : vector<128x128xf32>
    %c0_22 = arith.constant 0 : index
    %c0_23 = arith.constant 0 : index
    %29 = vector.load %arg10[%c0_22, %c0_23] : memref<1x128xf32, #tpu.memory_space<vmem>>, vector<1x128xf32>
    %30 = vector.broadcast %29 : vector<1x128xf32> to vector<128x128xf32>
    %31 = arith.addf %28, %30 : vector<128x128xf32>
    %32 = tpu.iota {dimensions = array<i32: 1>} : vector<128x128xi32>
    %cst_24 = arith.constant dense<0x7F800000> : vector<128xf32>
    %33 = vector.multi_reduction <minimumf>, %31, %cst_24 [1] : vector<128x128xf32> to vector<128xf32>
    %34 = vector.shape_cast %33 : vector<128xf32> to vector<128x1xf32>
    %35 = vector.broadcast %34 : vector<128x1xf32> to vector<128x128xf32>
    %36 = arith.cmpf oeq, %31, %35 : vector<128x128xf32>
    %c128_i32 = arith.constant 128 : i32
    %37 = vector.broadcast %c128_i32 : i32 to vector<128x128xi32>
    %38 = arith.select %36, %32, %37 : vector<128x128xi1>, vector<128x128xi32>
    %cst_25 = arith.constant dense<2147483647> : vector<128xi32>
    %39 = vector.multi_reduction <minsi>, %38, %cst_25 [1] : vector<128x128xi32> to vector<128xi32>
    %40 = vector.shape_cast %39 : vector<128xi32> to vector<128x1xi32>
    %41 = vector.broadcast %40 : vector<128x1xi32> to vector<128x128xi32>
    %42 = arith.cmpi eq, %32, %41 : vector<128x128xi32>
    %43 = arith.extui %42 : vector<128x128xi1> to vector<128x128xi32>
    %44 = arith.sitofp %43 : vector<128x128xi32> to vector<128x128xf32>
    %c0_26 = arith.constant 0 : index
    %c0_27 = arith.constant 0 : index
    %45 = vector.load %arg8[%c0_26, %c0_27] : memref<128x128xf32, #tpu.memory_space<vmem>>, vector<128x128xf32>
    %cst_28 = arith.constant dense<0.000000e+00> : vector<128x128xf32>
    %46 = tpu.matmul %44, %45, %cst_28 {dimension_numbers = #tpu.dot_dimension_numbers<[1], [0], [0], [1], [0, 0, 1, 1], [], []>} : vector<128x128xf32>, vector<128x128xf32>, vector<128x128xf32> -> vector<128x128xf32>
    %c128_i32_29 = arith.constant 128 : i32
    %47 = arith.muli %arg0, %c128_i32_29 : i32
    %48 = tpu.iota {dimensions = array<i32: 0>} : vector<128x1xi32>
    %49 = vector.broadcast %47 : i32 to vector<128x1xi32>
    %50 = arith.addi %49, %48 : vector<128x1xi32>
    %c200_i32 = arith.constant 200 : i32
    %51 = vector.broadcast %c200_i32 : i32 to vector<128x1xi32>
    %52 = arith.cmpi slt, %50, %51 : vector<128x1xi32>
    %53 = arith.extui %52 : vector<128x1xi1> to vector<128x1xi32>
    %54 = arith.sitofp %53 : vector<128x1xi32> to vector<128x1xf32>
    %55 = arith.subf %46, %19 : vector<128x128xf32>
    %56 = vector.broadcast %54 : vector<128x1xf32> to vector<128x128xf32>
    %57 = arith.mulf %55, %56 : vector<128x128xf32>
    %58 = arith.mulf %57, %57 : vector<128x128xf32>
    %cst_30 = arith.constant 1.000000e+00 : f32
    %59 = vector.broadcast %cst_30 : f32 to vector<1x128xf32>
    %cst_31 = arith.constant dense<0.000000e+00> : vector<1x128xf32>
    %60 = tpu.matmul %59, %58, %cst_31 {dimension_numbers = #tpu.dot_dimension_numbers<[1], [0], [0], [1], [0, 0, 1, 1], [], []>} : vector<1x128xf32>, vector<128x128xf32>, vector<1x128xf32> -> vector<1x128xf32>
    %61 = vector.shape_cast %60 : vector<1x128xf32> to vector<1x1x128xf32>
    %cst_32 = arith.constant dense<0.000000e+00> : vector<1xf32>
    %62 = vector.multi_reduction <add>, %61, %cst_32 [1, 2] : vector<1x1x128xf32> to vector<1xf32>
    %63 = vector.shape_cast %62 : vector<1xf32> to vector<1x1x1xf32>
    %64 = vector.extract %63[0, 0, 0] : f32 from vector<1x1x1xf32>
    %65 = vector.broadcast %64 : f32 to vector<1x8x128xf32>
    %c0_33 = arith.constant 0 : index
    %c0_34 = arith.constant 0 : index
    %c0_35 = arith.constant 0 : index
    %66 = vector.load %arg18[%c0_33, %c0_34, %c0_35] : memref<1x8x128xf32, #tpu.memory_space<vmem>>, vector<1x8x128xf32>
    tpu.vector_store %arg18[%c0_33, %c0_34, %c0_35], %65 {strides = array<i32>} : memref<1x8x128xf32, #tpu.memory_space<vmem>>, vector<1x8x128xf32>,
    %c0_36 = arith.constant 0 : index
    %c0_37 = arith.constant 0 : index
    %67 = vector.load %arg11[%c0_36, %c0_37] : memref<128x128xf32, #tpu.memory_space<vmem>>, vector<128x128xf32>
    %cst_38 = arith.constant dense<0.000000e+00> : vector<128x128xf32>
    %68 = tpu.matmul %46, %67, %cst_38 {dimension_numbers = #tpu.dot_dimension_numbers<[1], [0], [0], [1], [0, 0, 1, 1], [], []>} : vector<128x128xf32>, vector<128x128xf32>, vector<128x128xf32> -> vector<128x128xf32>
    %c0_39 = arith.constant 0 : index
    %c0_40 = arith.constant 0 : index
    %69 = vector.load %arg12[%c0_39, %c0_40] : memref<1x128xf32, #tpu.memory_space<vmem>>, vector<1x128xf32>
    %70 = vector.broadcast %69 : vector<1x128xf32> to vector<128x128xf32>
    %71 = arith.addf %68, %70 : vector<128x128xf32>
    %cst_41 = arith.constant 0.000000e+00 : f32
    %72 = vector.broadcast %cst_41 : f32 to vector<128x128xf32>
    %73 = arith.maximumf %71, %72 : vector<128x128xf32>
    %c0_42 = arith.constant 0 : index
    %c0_43 = arith.constant 0 : index
    %74 = vector.load %arg13[%c0_42, %c0_43] : memref<128x128xf32, #tpu.memory_space<vmem>>, vector<128x128xf32>
    %cst_44 = arith.constant dense<0.000000e+00> : vector<128x128xf32>
    %75 = tpu.matmul %73, %74, %cst_44 {dimension_numbers = #tpu.dot_dimension_numbers<[1], [0], [0], [1], [0, 0, 1, 1], [], []>} : vector<128x128xf32>, vector<128x128xf32>, vector<128x128xf32> -> vector<128x128xf32>
    %c0_45 = arith.constant 0 : index
    %c0_46 = arith.constant 0 : index
    %76 = vector.load %arg14[%c0_45, %c0_46] : memref<1x128xf32, #tpu.memory_space<vmem>>, vector<1x128xf32>
    %77 = vector.broadcast %76 : vector<1x128xf32> to vector<128x128xf32>
    %78 = arith.addf %75, %77 : vector<128x128xf32>
    %cst_47 = arith.constant 0.000000e+00 : f32
    %79 = vector.broadcast %cst_47 : f32 to vector<128x128xf32>
    %80 = arith.maximumf %78, %79 : vector<128x128xf32>
    %c0_48 = arith.constant 0 : index
    %c0_49 = arith.constant 0 : index
    %81 = vector.load %arg15[%c0_48, %c0_49] : memref<128x128xf32, #tpu.memory_space<vmem>>, vector<128x128xf32>
    %cst_50 = arith.constant dense<0.000000e+00> : vector<128x128xf32>
    %82 = tpu.matmul %80, %81, %cst_50 {dimension_numbers = #tpu.dot_dimension_numbers<[1], [0], [0], [1], [0, 0, 1, 1], [], []>} : vector<128x128xf32>, vector<128x128xf32>, vector<128x128xf32> -> vector<128x128xf32>
    %c0_51 = arith.constant 0 : index
    %c0_52 = arith.constant 0 : index
    %83 = vector.load %arg16[%c0_51, %c0_52] : memref<1x128xf32, #tpu.memory_space<vmem>>, vector<1x128xf32>
    %84 = vector.broadcast %83 : vector<1x128xf32> to vector<128x128xf32>
    %85 = arith.addf %82, %84 : vector<128x128xf32>
    %c0_53 = arith.constant 0 : index
    %c0_54 = arith.constant 0 : index
    %86 = vector.load %arg17[%c0_53, %c0_54] : memref<128x128xf32, #tpu.memory_space<vmem>>, vector<128x128xf32>
    tpu.vector_store %arg17[%c0_53, %c0_54], %85 {strides = array<i32>} : memref<128x128xf32, #tpu.memory_space<vmem>>, vector<128x128xf32>,
    return
  }
  func.func @transform_0(%arg0: i32) -> (i32, i32) {
    %c0_i32 = arith.constant 0 : i32
    %c0_i32_0 = arith.constant 0 : i32
    return %arg0, %c0_i32 : i32, i32
  }
  func.func @transform_1(%arg0: i32) -> (i32, i32) {
    %c0_i32 = arith.constant 0 : i32
    %c0_i32_0 = arith.constant 0 : i32
    %c0_i32_1 = arith.constant 0 : i32
    return %c0_i32, %c0_i32_0 : i32, i32
  }
  func.func @transform_2(%arg0: i32) -> (i32, i32) {
    %c0_i32 = arith.constant 0 : i32
    %c0_i32_0 = arith.constant 0 : i32
    %c0_i32_1 = arith.constant 0 : i32
    return %c0_i32, %c0_i32_0 : i32, i32
  }
  func.func @transform_3(%arg0: i32) -> (i32, i32) {
    %c0_i32 = arith.constant 0 : i32
    %c0_i32_0 = arith.constant 0 : i32
    %c0_i32_1 = arith.constant 0 : i32
    return %c0_i32, %c0_i32_0 : i32, i32
  }
  func.func @transform_4(%arg0: i32) -> (i32, i32) {
    %c0_i32 = arith.constant 0 : i32
    %c0_i32_0 = arith.constant 0 : i32
    %c0_i32_1 = arith.constant 0 : i32
    return %c0_i32, %c0_i32_0 : i32, i32
  }
  func.func @transform_5(%arg0: i32) -> (i32, i32) {
    %c0_i32 = arith.constant 0 : i32
    %c0_i32_0 = arith.constant 0 : i32
    %c0_i32_1 = arith.constant 0 : i32
    return %c0_i32, %c0_i32_0 : i32, i32
  }
  func.func @transform_6(%arg0: i32) -> (i32, i32) {
    %c0_i32 = arith.constant 0 : i32
    %c0_i32_0 = arith.constant 0 : i32
    %c0_i32_1 = arith.constant 0 : i32
    return %c0_i32, %c0_i32_0 : i32, i32
  }
  func.func @transform_7(%arg0: i32) -> (i32, i32) {
    %c0_i32 = arith.constant 0 : i32
    %c0_i32_0 = arith.constant 0 : i32
    %c0_i32_1 = arith.constant 0 : i32
    return %c0_i32, %c0_i32_0 : i32, i32
  }
  func.func @transform_8(%arg0: i32) -> (i32, i32) {
    %c0_i32 = arith.constant 0 : i32
    %c0_i32_0 = arith.constant 0 : i32
    %c0_i32_1 = arith.constant 0 : i32
    return %c0_i32, %c0_i32_0 : i32, i32
  }
  func.func @transform_9(%arg0: i32) -> (i32, i32) {
    %c0_i32 = arith.constant 0 : i32
    %c0_i32_0 = arith.constant 0 : i32
    %c0_i32_1 = arith.constant 0 : i32
    return %c0_i32, %c0_i32_0 : i32, i32
  }
  func.func @transform_10(%arg0: i32) -> (i32, i32) {
    %c0_i32 = arith.constant 0 : i32
    %c0_i32_0 = arith.constant 0 : i32
    %c0_i32_1 = arith.constant 0 : i32
    return %c0_i32, %c0_i32_0 : i32, i32
  }
  func.func @transform_11(%arg0: i32) -> (i32, i32) {
    %c0_i32 = arith.constant 0 : i32
    %c0_i32_0 = arith.constant 0 : i32
    %c0_i32_1 = arith.constant 0 : i32
    return %c0_i32, %c0_i32_0 : i32, i32
  }
  func.func @transform_12(%arg0: i32) -> (i32, i32) {
    %c0_i32 = arith.constant 0 : i32
    %c0_i32_0 = arith.constant 0 : i32
    %c0_i32_1 = arith.constant 0 : i32
    return %c0_i32, %c0_i32_0 : i32, i32
  }
  func.func @transform_13(%arg0: i32) -> (i32, i32) {
    %c0_i32 = arith.constant 0 : i32
    %c0_i32_0 = arith.constant 0 : i32
    %c0_i32_1 = arith.constant 0 : i32
    return %c0_i32, %c0_i32_0 : i32, i32
  }
  func.func @transform_14(%arg0: i32) -> (i32, i32) {
    %c0_i32 = arith.constant 0 : i32
    %c0_i32_0 = arith.constant 0 : i32
    %c0_i32_1 = arith.constant 0 : i32
    return %c0_i32, %c0_i32_0 : i32, i32
  }
  func.func @transform_15(%arg0: i32) -> (i32, i32) {
    %c0_i32 = arith.constant 0 : i32
    %c0_i32_0 = arith.constant 0 : i32
    %c0_i32_1 = arith.constant 0 : i32
    return %c0_i32, %c0_i32_0 : i32, i32
  }
  func.func @transform_16(%arg0: i32) -> (i32, i32) {
    %c0_i32 = arith.constant 0 : i32
    %c0_i32_0 = arith.constant 0 : i32
    return %arg0, %c0_i32 : i32, i32
  }
  func.func @transform_17(%arg0: i32) -> (i32, i32, i32) {
    %c0_i32 = arith.constant 0 : i32
    %c0_i32_0 = arith.constant 0 : i32
    %c0_i32_1 = arith.constant 0 : i32
    return %arg0, %c0_i32, %c0_i32_0 : i32, i32, i32
  }
}

</mosaic_0001>

<bundles_post_ra>
// kernel: vqvae_forward.1
= control target key start
LH: loop header
LB: loop body
LE: loop exit
PB: predicated region body
PF: predicated region fallthrough
CT: control target
= control target key end

     0   :  { %s2200_s24 = smov 0   ;;  %s3324_s0 = inlined_call_operand.vmem [shape: f32[256,128], index: 0, kind: input, shape index: {}]   ;;  %s3325_s1 = inlined_call_operand.vmem [shape: f32[128,128], index: 1, kind: input, shape index: {}]   ;;  %s3326_s2 = inlined_call_operand.vmem [shape: f32[1,128], index: 2, kind: input, shape index: {}]   ;;  %s3327_s3 = inlined_call_operand.vmem [shape: f32[128,128], index: 3, kind: input, shape index: {}]   ;;  %s3328_s4 = inlined_call_operand.vmem [shape: f32[1,128], index: 4, kind: input, shape index: {}]   ;;  %s3329_s5 = inlined_call_operand.vmem [shape: f32[128,128], index: 5, kind: input, shape index: {}]   ;;  %s3330_s6 = inlined_call_operand.vmem [shape: f32[1,128], index: 6, kind: input, shape index: {}]   ;;  %s3331_s7 = inlined_call_operand.vmem [shape: f32[128,128], index: 7, kind: input, shape index: {}]   ;;  %s3332_s8 = inlined_call_operand.vmem [shape: f32[128,128], index: 8, kind: input, shape index: {}]   ;;  %s3333_s9 = inlined_call_operand.vmem [shape: f32[1,128], index: 9, kind: input, shape index: {}]   ;;  %s3334_s10 = inlined_call_operand.vmem [shape: f32[128,128], index: 10, kind: input, shape index: {}]   ;;  %s3335_s11 = inlined_call_operand.vmem [shape: f32[1,128], index: 11, kind: input, shape index: {}]   ;;  %s3336_s12 = inlined_call_operand.vmem [shape: f32[128,128], index: 12, kind: input, shape index: {}]   ;;  %s3337_s13 = inlined_call_operand.vmem [shape: f32[1,128], index: 13, kind: input, shape index: {}]   ;;  %s3338_s14 = inlined_call_operand.vmem [shape: f32[128,128], index: 14, kind: input, shape index: {}]   ;;  %s3339_s15 = inlined_call_operand.vmem [shape: f32[1,128], index: 15, kind: input, shape index: {}]   ;;  %s3340_s16 = inlined_call_operand.vmem [shape: f32[256,128], index: 16, kind: output, shape index: {0}]   ;;  %s3341_s17 = inlined_call_operand.vmem [shape: f32[2,8,128], index: 17, kind: output, shape index: {1}]  }
   0x1   :  { %3343 = sst [smem:[#allocation2_spill]] %s3324_s0 }
   0x2   :  { %3344 = sst [smem:[#allocation3_spill]] %s3325_s1 }
   0x3 LB: > { %s2206_s25 = sadd.s32 4294967295, %s2106_s24   ;;  %p2024_p0 = scmp.ge.s32.totalorder %s2106_s24, 1  ;;  %s2106_s24 = sphi %s2200_s24, %s28_s24  }
   0x4   : > { %p491_p1 = scmp.lt.s32.totalorder %s2106_s24, 3 }
   0x6   : > { %p492_p2 = pnand %p2024_p0, %p491_p1 }
   0x7   : > { %s3345_s28 = sld [smem:[#allocation3_spill]] (!%p492_p2)  ;;  %s2025_s30 = sshll.u32 (!%p492_p2), %s2206_s25, 4 }
   0x8   : > { %495 = sbr.rel (%p492_p2) target bundleno = 1727 (0x6bf), region = 84  ;;  %p548_p3 = scmp.lt.s32.totalorder (!%p492_p2), %s2025_s30, 31 }
   0x9   : > { %s3346_s23 = sld [smem:[#allocation2_spill]] (!%p492_p2)  ;;  %s2062_s29 = sshll.u32 (!%p492_p2), %s2206_s25, 7 }
   0xa   : > { %p559_p4 = scmp.lt.s32.totalorder (!%p492_p2), %s2206_s25, 1 }
   0xd   : > { %v594_v0 = vld [vmem:[%s3345_s28 + $0x78] sm:$0xff]  ;;  %v593_v1 = vld [vmem:[%s3345_s28 + $0x70] sm:$0xff]  ;;  %v592_v2 = vld [vmem:[%s3345_s28 + $0x68] sm:$0xff]  ;;  %s3348_s30 = smov (!%p548_p3, %s2025_s30), 31  ;;  %s3350_s25 = smov (!%p559_p4, %s2206_s25), 1 }
   0xe   : > { %599 = vmatpush.msra.mxu0 %v594_v0  ;;  %v591_v3 = vld [vmem:[%s3345_s28 + $0x60] sm:$0xff]  ;;  %v590_v4 = vld [vmem:[%s3345_s28 + $0x58] sm:$0xff]  ;;  %v589_v5 = vld [vmem:[%s3345_s28 + $0x50] sm:$0xff]  ;;  %s2026_s0 = sshll.u32 %s3348_s30, 3  ;;  %s2029_s30 = sshll.u32 %s3350_s25, 3 }
   0xf   : > { %v588_v6 = vld [vmem:[%s3345_s28 + $0x48] sm:$0xff]  ;;  %v587_v7 = vld [vmem:[%s3345_s28 + $0x40] sm:$0xff]  ;;  %v586_v8 = vld [vmem:[%s3345_s28 + $0x38] sm:$0xff]  ;;  %s2264_s26 = scalar_lea.vmem %s3346_s23, %s2026_s0  ;;  %s3274_s23 = scalar_lea.vmem %s3340_s16, %s2026_s0 }
  0x10   : > { %600 = vmatpush.msra.mxu0 %v593_v1  ;;  %v585_v9 = vld [vmem:[%s3345_s28 + $0x30] sm:$0xff]  ;;  %v584_v10 = vld [vmem:[%s3345_s28 + $0x28] sm:$0xff]  ;;  %v583_v11 = vld [vmem:[%s3345_s28 + $0x20] sm:$0xff] }
  0x11   : > { %v582_v12 = vld [vmem:[%s3345_s28 + $0x18] sm:$0xff]  ;;  %v581_v13 = vld [vmem:[%s3345_s28 + $0x10] sm:$0xff]  ;;  %v580_v14 = vld [vmem:[%s3345_s28 + $0x8] sm:$0xff] }
  0x12   : > { %601 = vmatpush.msra.mxu0 %v592_v2  ;;  %v579_v15 = vld [vmem:[%s3345_s28] sm:$0xff]  ;;  %v564_v17 = vld [vmem:[%s2264_s26 + $0x8] sm:$0xff]  ;;  %v565_v18 = vld [vmem:[%s2264_s26 + $0x10] sm:$0xff] }
  0x13   : > { %v563_v16 = vld [vmem:[%s2264_s26] sm:$0xff]  ;;  %v695_v19 = vld [vmem:[%s3327_s3 + $0x78] sm:$0xff]  ;;  %v694_v20 = vld [vmem:[%s3327_s3 + $0x70] sm:$0xff] }
  0x14   : > { %602 = vmatpush.msra.mxu0 %v591_v3  ;;  %700 = vmatpush.msra.mxu1 %v695_v19  ;;  %v693_v21 = vld [vmem:[%s3327_s3 + $0x68] sm:$0xff]  ;;  %v692_v22 = vld [vmem:[%s3327_s3 + $0x60] sm:$0xff]  ;;  %v566_v23 = vld [vmem:[%s2264_s26 + $0x18] sm:$0xff] }
  0x15   : > { %v691_v24 = vld [vmem:[%s3327_s3 + $0x58] sm:$0xff]  ;;  %v690_v25 = vld [vmem:[%s3327_s3 + $0x50] sm:$0xff]  ;;  %v689_v26 = vld [vmem:[%s3327_s3 + $0x48] sm:$0xff] }
  0x16   : > { %603 = vmatpush.msra.mxu0 %v590_v4  ;;  %701 = vmatpush.msra.mxu1 %v694_v20  ;;  %v688_v27 = vld [vmem:[%s3327_s3 + $0x40] sm:$0xff]  ;;  %v687_v29 = vld [vmem:[%s3327_s3 + $0x38] sm:$0xff]  ;;  %v686_v30 = vld [vmem:[%s3327_s3 + $0x30] sm:$0xff] }
  0x17   : > { %v567_v28 = vld [vmem:[%s2264_s26 + $0x20] sm:$0xff]  ;;  %v685_v31 = vld [vmem:[%s3327_s3 + $0x28] sm:$0xff]  ;;  %v683_v34 = vld [vmem:[%s3327_s3 + $0x18] sm:$0xff] }
  0x18   : > { %604 = vmatpush.msra.mxu0 %v589_v5  ;;  %702 = vmatpush.msra.mxu1 %v693_v21  ;;  %v684_v32 = vld [vmem:[%s3327_s3 + $0x20] sm:$0xff]  ;;  %v568_v33 = vld [vmem:[%s2264_s26 + $0x28] sm:$0xff]  ;;  %v569_v35 = vld [vmem:[%s2264_s26 + $0x30] sm:$0xff] }
  0x19   : > { %v682_v36 = vld [vmem:[%s3327_s3 + $0x10] sm:$0xff]  ;;  %v681_v37 = vld [vmem:[%s3327_s3 + $0x8] sm:$0xff]  ;;  %v570_v38 = vld [vmem:[%s2264_s26 + $0x38] sm:$0xff] }
  0x1a   : > { %605 = vmatpush.msra.mxu0 %v588_v6  ;;  %703 = vmatpush.msra.mxu1 %v692_v22  ;;  %v680_v39 = vld [vmem:[%s3327_s3] sm:$0xff]  ;;  %v572_v41 = vld [vmem:[%s2264_s26 + $0x48] sm:$0xff]  ;;  %v573_v42 = vld [vmem:[%s2264_s26 + $0x50] sm:$0xff] }
  0x1b   : > { %v571_v40 = vld [vmem:[%s2264_s26 + $0x40] sm:$0xff]  ;;  %v574_v46 = vld [vmem:[%s2264_s26 + $0x58] sm:$0xff]  ;;  %v576_v54 = vld [vmem:[%s2264_s26 + $0x68] sm:$0xff] }
  0x1c   : > { %606 = vmatpush.msra.mxu0 %v587_v7  ;;  %704 = vmatpush.msra.mxu1 %v691_v24  ;;  %v2331_v43 = vld [vmem:[%s3326_s2] ss:$0 sm:$0xff]  ;;  %v796_v56 = vld [vmem:[%s3329_s5 + $0x78] sm:$0xff]  ;;  %v795_v57 = vld [vmem:[%s3329_s5 + $0x70] sm:$0xff] }
  0x1d   : > { %v575_v50 = vld [vmem:[%s2264_s26 + $0x60] sm:$0xff]  ;;  %801 = vmatpush.msra.mxu2 %v796_v56  ;;  %v577_v58 = vld [vmem:[%s2264_s26 + $0x70] sm:$0xff]  ;;  %v794_v59 = vld [vmem:[%s3329_s5 + $0x68] sm:$0xff] }
  0x1e   : > { %607 = vmatpush.msra.mxu0 %v586_v8  ;;  %705 = vmatpush.msra.mxu1 %v690_v25  ;;  %v793_v62 = vld [vmem:[%s3329_s5 + $0x60] sm:$0xff]  ;;  %v792_v0 = vld [vmem:[%s3329_s5 + $0x58] sm:$0xff]  ;;  %v791_v1 = vld [vmem:[%s3329_s5 + $0x50] sm:$0xff] }
  0x1f   : > { %802 = vmatpush.msra.mxu2 %v795_v57  ;;  %v578_v2 = vld [vmem:[%s2264_s26 + $0x78] sm:$0xff]  ;;  %v790_v3 = vld [vmem:[%s3329_s5 + $0x48] sm:$0xff]  ;;  %v789_v6 = vld [vmem:[%s3329_s5 + $0x40] sm:$0xff] }
  0x20   : > { %608 = vmatpush.msra.mxu0 %v585_v9  ;;  %706 = vmatpush.msra.mxu1 %v689_v26  ;;  %v788_v8 = vld [vmem:[%s3329_s5 + $0x38] sm:$0xff]  ;;  %v787_v9 = vld [vmem:[%s3329_s5 + $0x30] sm:$0xff]  ;;  %v782_v22 = vld [vmem:[%s3329_s5 + $0x8] sm:$0xff] }
  0x21   : > { %803 = vmatpush.msra.mxu2 %v794_v59  ;;  %v783_v21 = vld [vmem:[%s3329_s5 + $0x10] sm:$0xff]  ;;  %v781_v24 = vld [vmem:[%s3329_s5] sm:$0xff] }
  0x22   : > { %609 = vmatpush.msra.mxu0 %v584_v10  ;;  %707 = vmatpush.msra.mxu1 %v688_v27  ;;  %v786_v10 = vld [vmem:[%s3329_s5 + $0x28] sm:$0xff]  ;;  %v928_v56 = vld [vmem:[%s3332_s8 + $0x70] sm:$0xff] }
  0x23   : > { %804 = vmatpush.msra.mxu2 %v793_v62  ;;  %v926_v62 = vld [vmem:[%s3332_s8 + $0x60] sm:$0xff] }
  0x24   : > { %610 = vmatpush.msra.mxu0 %v583_v11  ;;  %708 = vmatpush.msra.mxu1 %v687_v29 }
  0x25   : > { %805 = vmatpush.msra.mxu2 %v792_v0  ;;  %v925_v0 = vld [vmem:[%s3332_s8 + $0x58] sm:$0xff] }
  0x26   : > { %611 = vmatpush.msra.mxu0 %v582_v12  ;;  %709 = vmatpush.msra.mxu1 %v686_v30 }
  0x27   : > { %806 = vmatpush.msra.mxu2 %v791_v1 }
  0x28   : > { %612 = vmatpush.msra.mxu0 %v581_v13  ;;  %710 = vmatpush.msra.mxu1 %v685_v31  ;;  %v785_v13 = vld [vmem:[%s3329_s5 + $0x20] sm:$0xff] }
  0x29   : > { %807 = vmatpush.msra.mxu2 %v790_v3 }
  0x2a   : > { %613 = vmatpush.msra.mxu0 %v580_v14  ;;  %711 = vmatpush.msra.mxu1 %v684_v32 }
  0x2b   : > { %808 = vmatpush.msra.mxu2 %v789_v6 }
  0x2c   : > { %614 = vmatpush.msra.mxu0 %v579_v15  ;;  %712 = vmatpush.msra.mxu1 %v683_v34  ;;  %v2400_v34 = vld [vmem:[%s3328_s4] ss:$0 sm:$0xff] }
  0x2d   : > { %615 = vmatmul.f32.vlgmr.msra.gmra.mxu0 %v563_v16  ;;  %809 = vmatpush.msra.mxu2 %v788_v8  ;;  %v922_v8 = vld [vmem:[%s3332_s8 + $0x40] sm:$0xff] }
  0x2e   : > { %713 = vmatpush.msra.mxu1 %v682_v36 }
  0x2f   : > { %810 = vmatpush.msra.mxu2 %v787_v9 }
  0x30   : > { %714 = vmatpush.msra.mxu1 %v681_v37 }
  0x31   : > { %811 = vmatpush.msra.mxu2 %v786_v10  ;;  %v920_v10 = vld [vmem:[%s3332_s8 + $0x30] sm:$0xff] }
  0x32   : > { %715 = vmatpush.msra.mxu1 %v680_v39 }
  0x33   : > { %812 = vmatpush.msra.mxu2 %v785_v13 }
  0x35   : > { %618 = vmatmul.f32.gmra.mxu0 %v564_v17 }
  0x3d   : > { %621 = vmatmul.f32.gmra.mxu0 %v565_v18  ;;  %v784_v18 = vld [vmem:[%s3329_s5 + $0x18] sm:$0xff] }
  0x3e   : > { %813 = vmatpush.msra.mxu2 %v784_v18  ;;  %v918_v18 = vld [vmem:[%s3332_s8 + $0x20] sm:$0xff] }
  0x40   : > { %814 = vmatpush.msra.mxu2 %v783_v21 }
  0x42   : > { %815 = vmatpush.msra.mxu2 %v782_v22 }
  0x44   : > { %816 = vmatpush.msra.mxu2 %v781_v24  ;;  %v915_v24 = vld [vmem:[%s3332_s8 + $0x8] sm:$0xff] }
  0x45   : > { %624 = vmatmul.f32.gmra.mxu0 %v566_v23 }
  0x4d   : > { %627 = vmatmul.f32.gmra.mxu0 %v567_v28 }
  0x55   : > { %630 = vmatmul.f32.gmra.mxu0 %v568_v33 }
  0x5d   : > { %633 = vmatmul.f32.gmra.mxu0 %v569_v35 }
  0x65   : > { %636 = vmatmul.f32.gmra.mxu0 %v570_v38 }
  0x6d   : > { %639 = vmatmul.f32.gmra.mxu0 %v571_v40 }
  0x75   : > { %642 = vmatmul.f32.gmra.mxu0 %v572_v41 }
  0x7d   : > { %645 = vmatmul.f32.gmra.mxu0 %v573_v42 }
  0x85   : > { %648 = vmatmul.f32.gmra.mxu0 %v574_v46 }
  0x8d   : > { %651 = vmatmul.f32.gmra.mxu0 %v575_v50 }
  0x95   : > { %654 = vmatmul.f32.gmra.mxu0 %v576_v54 }
  0x9d   : > { %657 = vmatmul.f32.gmra.mxu0 %v577_v58  ;;  %v927_v58 = vld [vmem:[%s3332_s8 + $0x68] sm:$0xff] }
  0xa5   : > { %660 = vmatmul.f32.gmra.mxu0 %v578_v2  ;;  %v924_v2 = vld [vmem:[%s3332_s8 + $0x50] sm:$0xff] }
  0xaa   : > { %v616_v44 = vpop.f32.mrf.mxu0 }
  0xab   : > { %v617_v45 = vadd.f32 %v2331_v43, %v616_v44 }
  0xad   : > { %v664_v47 = vmax.f32 %v617_v45, 0.0 }
  0xaf   : > { %716 = vmatmul.f32.vlgmr.msra.gmra.mxu1 %v664_v47 }
  0xb2   : > { %v619_v48 = vpop.f32.mrf.mxu0 }
  0xb3   : > { %v620_v49 = vadd.f32 %v2331_v43, %v619_v48 }
  0xb5   : > { %v665_v51 = vmax.f32 %v620_v49, 0.0 }
  0xb7   : > { %719 = vmatmul.f32.gmra.mxu1 %v665_v51 }
  0xba   : > { %v622_v52 = vpop.f32.mrf.mxu0 }
  0xbb   : > { %v623_v53 = vadd.f32 %v2331_v43, %v622_v52 }
  0xbd   : > { %v666_v55 = vmax.f32 %v623_v53, 0.0 }
  0xbf   : > { %722 = vmatmul.f32.gmra.mxu1 %v666_v55  ;;  %v929_v55 = vld [vmem:[%s3332_s8 + $0x78] sm:$0xff] }
  0xc0   : > { %930 = vmatpush.msra.mxu3 %v929_v55 }
  0xc2   : > { %v625_v60 = vpop.f32.mrf.mxu0  ;;  %931 = vmatpush.msra.mxu3 %v928_v56 }
  0xc3   : > { %v626_v61 = vadd.f32 %v2331_v43, %v625_v60 }
  0xc4   : > { %932 = vmatpush.msra.mxu3 %v927_v58 }
  0xc5   : > { %v667_v63 = vmax.f32 %v626_v61, 0.0 }
  0xc6   : > { %933 = vmatpush.msra.mxu3 %v926_v62 }
  0xc7   : > { %725 = vmatmul.f32.gmra.mxu1 %v667_v63 }
  0xc8   : > { %934 = vmatpush.msra.mxu3 %v925_v0 }
  0xca   : > { %v628_v4 = vpop.f32.mrf.mxu0  ;;  %935 = vmatpush.msra.mxu3 %v924_v2 }
  0xcb   : > { %v629_v5 = vadd.f32 %v2331_v43, %v628_v4  ;;  %v923_v4 = vld [vmem:[%s3332_s8 + $0x48] sm:$0xff] }
  0xcc   : > { %936 = vmatpush.msra.mxu3 %v923_v4 }
  0xcd   : > { %v668_v7 = vmax.f32 %v629_v5, 0.0 }
  0xce   : > { %937 = vmatpush.msra.mxu3 %v922_v8 }
  0xcf   : > { %728 = vmatmul.f32.gmra.mxu1 %v668_v7 }
  0xd2   : > { %v631_v11 = vpop.f32.mrf.mxu0 }
  0xd3   : > { %v632_v12 = vadd.f32 %v2331_v43, %v631_v11 }
  0xd5   : > { %v669_v14 = vmax.f32 %v632_v12, 0.0 }
  0xd7   : > { %731 = vmatmul.f32.gmra.mxu1 %v669_v14 }
  0xda   : > { %v634_v15 = vpop.f32.mrf.mxu0 }
  0xdb   : > { %v635_v16 = vadd.f32 %v2331_v43, %v634_v15 }
  0xdd   : > { %v670_v17 = vmax.f32 %v635_v16, 0.0 }
  0xdf   : > { %734 = vmatmul.f32.gmra.mxu1 %v670_v17  ;;  %v919_v17 = vld [vmem:[%s3332_s8 + $0x28] sm:$0xff] }
  0xe2   : > { %v637_v19 = vpop.f32.mrf.mxu0 }
  0xe3   : > { %v638_v20 = vadd.f32 %v2331_v43, %v637_v19  ;;  %v917_v19 = vld [vmem:[%s3332_s8 + $0x18] sm:$0xff] }
  0xe5   : > { %v671_v23 = vmax.f32 %v638_v20, 0.0  ;;  %v916_v20 = vld [vmem:[%s3332_s8 + $0x10] sm:$0xff] }
  0xe7   : > { %737 = vmatmul.f32.gmra.mxu1 %v671_v23 }
  0xea   : > { %v640_v25 = vpop.f32.mrf.mxu0 }
  0xeb   : > { %v641_v26 = vadd.f32 %v2331_v43, %v640_v25 }
  0xed   : > { %v672_v27 = vmax.f32 %v641_v26, 0.0 }
  0xef   : > { %740 = vmatmul.f32.gmra.mxu1 %v672_v27  ;;  %v914_v27 = vld [vmem:[%s3332_s8] sm:$0xff] }
  0xf2   : > { %v643_v28 = vpop.f32.mrf.mxu0 }
  0xf3   : > { %v644_v29 = vadd.f32 %v2331_v43, %v643_v28 }
  0xf5   : > { %v673_v30 = vmax.f32 %v644_v29, 0.0 }
  0xf7   : > { %743 = vmatmul.f32.gmra.mxu1 %v673_v30 }
  0xfa   : > { %v646_v31 = vpop.f32.mrf.mxu0 }
  0xfb   : > { %v647_v32 = vadd.f32 %v2331_v43, %v646_v31 }
  0xfd   : > { %v674_v33 = vmax.f32 %v647_v32, 0.0 }
  0xff   : > { %746 = vmatmul.f32.gmra.mxu1 %v674_v33 }
 0x102   : > { %v649_v35 = vpop.f32.mrf.mxu0 }
 0x103   : > { %v650_v36 = vadd.f32 %v2331_v43, %v649_v35 }
 0x105   : > { %v675_v38 = vmax.f32 %v650_v36, 0.0 }
 0x107   : > { %749 = vmatmul.f32.gmra.mxu1 %v675_v38 }
 0x10a   : > { %v652_v41 = vpop.f32.mrf.mxu0 }
 0x10b   : > { %v653_v42 = vadd.f32 %v2331_v43, %v652_v41 }
 0x10d   : > { %v676_v45 = vmax.f32 %v653_v42, 0.0 }
 0x10f   : > { %752 = vmatmul.f32.gmra.mxu1 %v676_v45 }
 0x112   : > { %v655_v48 = vpop.f32.mrf.mxu0 }
 0x113   : > { %v656_v49 = vadd.f32 %v2331_v43, %v655_v48 }
 0x115   : > { %v677_v51 = vmax.f32 %v656_v49, 0.0 }
 0x117   : > { %755 = vmatmul.f32.gmra.mxu1 %v677_v51 }
 0x11a   : > { %v658_v54 = vpop.f32.mrf.mxu0 }
 0x11b   : > { %v659_v57 = vadd.f32 %v2331_v43, %v658_v54 }
 0x11d   : > { %v678_v60 = vmax.f32 %v659_v57, 0.0 }
 0x11f   : > { %758 = vmatmul.f32.gmra.mxu1 %v678_v60 }
 0x122   : > { %v661_v1 = vpop.f32.mrf.mxu0 }
 0x123   : > { %v662_v3 = vadd.f32 %v2331_v43, %v661_v1  ;;  %v921_v43 = vld [vmem:[%s3332_s8 + $0x38] sm:$0xff] }
 0x124   : > { %938 = vmatpush.msra.mxu3 %v921_v43 }
 0x125   : > { %v679_v6 = vmax.f32 %v662_v3, 0.0 }
 0x126   : > { %939 = vmatpush.msra.mxu3 %v920_v10 }
 0x127   : > { %761 = vmatmul.f32.gmra.mxu1 %v679_v6 }
 0x128   : > { %940 = vmatpush.msra.mxu3 %v919_v17 }
 0x12a   : > { %941 = vmatpush.msra.mxu3 %v918_v18 }
 0x12c   : > { %v717_v37 = vpop.f32.mrf.mxu1  ;;  %942 = vmatpush.msra.mxu3 %v917_v19 }
 0x12d   : > { %v718_v39 = vadd.f32 %v2400_v34, %v717_v37 }
 0x12e   : > { %943 = vmatpush.msra.mxu3 %v916_v20 }
 0x12f   : > { %v765_v40 = vmax.f32 %v718_v39, 0.0  ;;  %v2470_v39 = vld [vmem:[%s3330_s6] ss:$0 sm:$0xff] }
 0x130   : > { %944 = vmatpush.msra.mxu3 %v915_v24 }
 0x131   : > { %817 = vmatmul.f32.vlgmr.msra.gmra.mxu2 %v765_v40 }
 0x132   : > { %945 = vmatpush.msra.mxu3 %v914_v27 }
 0x134   : > { %v720_v44 = vpop.f32.mrf.mxu1 }
 0x135   : > { %v721_v46 = vadd.f32 %v2400_v34, %v720_v44 }
 0x137   : > { %v766_v47 = vmax.f32 %v721_v46, 0.0 }
 0x139   : > { %820 = vmatmul.f32.gmra.mxu2 %v766_v47 }
 0x13c   : > { %v723_v50 = vpop.f32.mrf.mxu1 }
 0x13d   : > { %v724_v52 = vadd.f32 %v2400_v34, %v723_v50 }
 0x13f   : > { %v767_v53 = vmax.f32 %v724_v52, 0.0 }
 0x141   : > { %823 = vmatmul.f32.gmra.mxu2 %v767_v53 }
 0x144   : > { %v726_v59 = vpop.f32.mrf.mxu1 }
 0x145   : > { %v727_v61 = vadd.f32 %v2400_v34, %v726_v59 }
 0x147   : > { %v768_v63 = vmax.f32 %v727_v61, 0.0 }
 0x149   : > { %826 = vmatmul.f32.gmra.mxu2 %v768_v63 }
 0x14c   : > { %v729_v5 = vpop.f32.mrf.mxu1 }
 0x14d   : > { %v730_v7 = vadd.f32 %v2400_v34, %v729_v5 }
 0x14f   : > { %v769_v9 = vmax.f32 %v730_v7, 0.0 }
 0x151   : > { %829 = vmatmul.f32.gmra.mxu2 %v769_v9 }
 0x154   : > { %v732_v11 = vpop.f32.mrf.mxu1 }
 0x155   : > { %v733_v12 = vadd.f32 %v2400_v34, %v732_v11 }
 0x157   : > { %v770_v13 = vmax.f32 %v733_v12, 0.0 }
 0x159   : > { %832 = vmatmul.f32.gmra.mxu2 %v770_v13 }
 0x15c   : > { %v735_v14 = vpop.f32.mrf.mxu1 }
 0x15d   : > { %v736_v15 = vadd.f32 %v2400_v34, %v735_v14 }
 0x15f   : > { %v771_v16 = vmax.f32 %v736_v15, 0.0 }
 0x161   : > { %835 = vmatmul.f32.gmra.mxu2 %v771_v16 }
 0x164   : > { %v738_v21 = vpop.f32.mrf.mxu1 }
 0x165   : > { %v739_v22 = vadd.f32 %v2400_v34, %v738_v21  ;;  %v2541_v21 = vld [vmem:[%s3333_s9] ss:$0 sm:$0xff] }
 0x167   : > { %v772_v23 = vmax.f32 %v739_v22, 0.0 }
 0x169   : > { %838 = vmatmul.f32.gmra.mxu2 %v772_v23 }
 0x16c   : > { %v741_v25 = vpop.f32.mrf.mxu1 }
 0x16d   : > { %v742_v26 = vadd.f32 %v2400_v34, %v741_v25 }
 0x16f   : > { %v773_v28 = vmax.f32 %v742_v26, 0.0 }
 0x171   : > { %841 = vmatmul.f32.gmra.mxu2 %v773_v28 }
 0x174   : > { %v744_v29 = vpop.f32.mrf.mxu1 }
 0x175   : > { %v745_v30 = vadd.f32 %v2400_v34, %v744_v29 }
 0x177   : > { %v774_v31 = vmax.f32 %v745_v30, 0.0 }
 0x179   : > { %844 = vmatmul.f32.gmra.mxu2 %v774_v31 }
 0x17c   : > { %v747_v32 = vpop.f32.mrf.mxu1 }
 0x17d   : > { %v748_v33 = vadd.f32 %v2400_v34, %v747_v32 }
 0x17f   : > { %v775_v35 = vmax.f32 %v748_v33, 0.0 }
 0x181   : > { %847 = vmatmul.f32.gmra.mxu2 %v775_v35 }
 0x184   : > { %v750_v36 = vpop.f32.mrf.mxu1 }
 0x185   : > { %v751_v37 = vadd.f32 %v2400_v34, %v750_v36 }
 0x187   : > { %v776_v38 = vmax.f32 %v751_v37, 0.0 }
 0x189   : > { %850 = vmatmul.f32.gmra.mxu2 %v776_v38 }
 0x18c   : > { %v753_v42 = vpop.f32.mrf.mxu1 }
 0x18d   : > { %v754_v44 = vadd.f32 %v2400_v34, %v753_v42 }
 0x18f   : > { %v777_v46 = vmax.f32 %v754_v44, 0.0 }
 0x191   : > { %853 = vmatmul.f32.gmra.mxu2 %v777_v46 }
 0x194   : > { %v756_v49 = vpop.f32.mrf.mxu1 }
 0x195   : > { %v757_v50 = vadd.f32 %v2400_v34, %v756_v49 }
 0x197   : > { %v778_v52 = vmax.f32 %v757_v50, 0.0 }
 0x199   : > { %856 = vmatmul.f32.gmra.mxu2 %v778_v52 }
 0x19c   : > { %v759_v55 = vpop.f32.mrf.mxu1 }
 0x19d   : > { %v760_v56 = vadd.f32 %v2400_v34, %v759_v55 }
 0x19f   : > { %v779_v58 = vmax.f32 %v760_v56, 0.0 }
 0x1a1   : > { %859 = vmatmul.f32.gmra.mxu2 %v779_v58 }
 0x1a4   : > { %v762_v61 = vpop.f32.mrf.mxu1 }
 0x1a5   : > { %v763_v62 = vadd.f32 %v2400_v34, %v762_v61 }
 0x1a7   : > { %v780_v0 = vmax.f32 %v763_v62, 0.0 }
 0x1a9   : > { %862 = vmatmul.f32.gmra.mxu2 %v780_v0 }
 0x1b4   : > { %v818_v40 = vpop.f32.mrf.mxu2 }
 0x1b5   : > { %v2473_v41 = vadd.f32 %v2470_v39, %v818_v40 }
 0x1b7   : > { %946 = vmatmul.f32.vlgmr.msra.gmra.mxu3 %v2473_v41  ;;  %v866_v45 = vmul.f32 %v2473_v41, %v2473_v41 }
 0x1b9   : > { %882 = vadd.xlane.f32.xlu0 %v866_v45 }
 0x1bc   : > { %v821_v47 = vpop.f32.mrf.mxu2 }
 0x1bd   : > { %v2480_v48 = vadd.f32 %v2470_v39, %v821_v47 }
 0x1bf   : > { %949 = vmatmul.f32.gmra.mxu3 %v2480_v48  ;;  %v867_v51 = vmul.f32 %v2480_v48, %v2480_v48 }
 0x1c1   : > { %884 = vadd.xlane.f32.xlu0 %v867_v51 }
 0x1c4   : > { %v824_v53 = vpop.f32.mrf.mxu2 }
 0x1c5   : > { %v2487_v54 = vadd.f32 %v2470_v39, %v824_v53 }
 0x1c7   : > { %952 = vmatmul.f32.gmra.mxu3 %v2487_v54  ;;  %v868_v57 = vmul.f32 %v2487_v54, %v2487_v54 }
 0x1c9   : > { %886 = vadd.xlane.f32.xlu1 %v868_v57 }
 0x1cc   : > { %v827_v59 = vpop.f32.mrf.mxu2 }
 0x1cd   : > { %v2494_v60 = vadd.f32 %v2470_v39, %v827_v59 }
 0x1cf   : > { %955 = vmatmul.f32.gmra.mxu3 %v2494_v60  ;;  %v869_v63 = vmul.f32 %v2494_v60, %v2494_v60 }
 0x1d1   : > { %888 = vadd.xlane.f32.xlu1 %v869_v63 }
 0x1d4   : > { %v830_v1 = vpop.f32.mrf.mxu2 }
 0x1d5   : > { %v2501_v2 = vadd.f32 %v2470_v39, %v830_v1 }
 0x1d7   : > { %958 = vmatmul.f32.gmra.mxu3 %v2501_v2  ;;  %v870_v3 = vmul.f32 %v2501_v2, %v2501_v2 }
 0x1d9   : > { %890 = vadd.xlane.f32.xlu2 %v870_v3 }
 0x1dc   : > { %v833_v4 = vpop.f32.mrf.mxu2 }
 0x1dd   : > { %v2507_v34 = vadd.f32 %v2470_v39, %v833_v4 }
 0x1df   : > { %961 = vmatmul.f32.gmra.mxu3 %v2507_v34  ;;  %v871_v5 = vmul.f32 %v2507_v34, %v2507_v34 }
 0x1e1   : > { %892 = vadd.xlane.f32.xlu2 %v871_v5 }
 0x1e4   : > { %v836_v6 = vpop.f32.mrf.mxu2 }
 0x1e5   : > { %v2513_v7 = vadd.f32 %v2470_v39, %v836_v6 }
 0x1e7   : > { %964 = vmatmul.f32.gmra.mxu3 %v2513_v7  ;;  %v872_v8 = vmul.f32 %v2513_v7, %v2513_v7 }
 0x1e9   : > { %894 = vadd.xlane.f32.xlu1 %v872_v8 }
 0x1ec   : > { %v839_v9 = vpop.f32.mrf.mxu2 }
 0x1ed   : > { %v2519_v43 = vadd.f32 %v2470_v39, %v839_v9 }
 0x1ef   : > { %967 = vmatmul.f32.gmra.mxu3 %v2519_v43  ;;  %v873_v32 = vmul.f32 %v2519_v43, %v2519_v43 }
 0x1f4   : > { %v842_v10 = vpop.f32.mrf.mxu2 }
 0x1f5   : > { %v2523_v11 = vadd.f32 %v2470_v39, %v842_v10 }
 0x1f7   : > { %970 = vmatmul.f32.gmra.mxu3 %v2523_v11  ;;  %v874_v45 = vmul.f32 %v2523_v11, %v2523_v11 }
 0x1fc   : > { %v845_v12 = vpop.f32.mrf.mxu2 }
 0x1fd   : > { %v2527_v13 = vadd.f32 %v2470_v39, %v845_v12 }
 0x1ff   : > { %973 = vmatmul.f32.gmra.mxu3 %v2527_v13  ;;  %v875_v51 = vmul.f32 %v2527_v13, %v2527_v13 }
 0x204   : > { %v848_v14 = vpop.f32.mrf.mxu2 }
 0x205   : > { %v2531_v15 = vadd.f32 %v2470_v39, %v848_v14 }
 0x207   : > { %976 = vmatmul.f32.gmra.mxu3 %v2531_v15  ;;  %v876_v61 = vmul.f32 %v2531_v15, %v2531_v15 }
 0x20c   : > { %v851_v16 = vpop.f32.mrf.mxu2 }
 0x20d   : > { %v2535_v17 = vadd.f32 %v2470_v39, %v851_v16 }
 0x20f   : > { %979 = vmatmul.f32.gmra.mxu3 %v2535_v17  ;;  %v877_v3 = vmul.f32 %v2535_v17, %v2535_v17 }
 0x214   : > { %v854_v23 = vpop.f32.mrf.mxu2 }
 0x215   : > { %v2544_v24 = vadd.f32 %v2470_v39, %v854_v23 }
 0x217   : > { %982 = vmatmul.f32.gmra.mxu3 %v2544_v24  ;;  %v878_v10 = vmul.f32 %v2544_v24, %v2544_v24 }
 0x21c   : > { %v857_v30 = vpop.f32.mrf.mxu2 }
 0x21d   : > { %v2552_v31 = vadd.f32 %v2470_v39, %v857_v30 }
 0x21f   : > { %985 = vmatmul.f32.gmra.mxu3 %v2552_v31  ;;  %v879_v14 = vmul.f32 %v2552_v31, %v2552_v31 }
 0x224   : > { %v860_v40 = vpop.f32.mrf.mxu2 }
 0x225   : > { %v2562_v42 = vadd.f32 %v2470_v39, %v860_v40 }
 0x227   : > { %988 = vmatmul.f32.gmra.mxu3 %v2562_v42  ;;  %v880_v16 = vmul.f32 %v2562_v42, %v2562_v42 }
 0x22c   : > { %v883_v18 = vpop.xlane.xlu0 %882  ;;  %v863_v52 = vpop.f32.mrf.mxu2 }
 0x22d   : > { %v2574_v53 = vadd.f32 %v2470_v39, %v863_v52 }
 0x22f   : > { %991 = vmatmul.f32.gmra.mxu3 %v2574_v53 }
 0x234   : > { %v885_v28 = vpop.xlane.xlu0 %884 }
 0x23a   : > { %v947_v19 = vpop.f32.mrf.mxu3 }
 0x23b   : > { %v995_v20 = vmul.f32 2.0, %v947_v19 }
 0x23c   : > { %v887_v35 = vpop.xlane.xlu1 %886 }
 0x23d   : > { %v1011_v22 = vsub.f32 %v883_v18, %v995_v20  ;;  %v881_v18 = vmul.f32 %v2574_v53, %v2574_v53  ;;  %v1047_v20 = vlaneseq }
 0x23f   : > { %v2547_v25 = vadd.f32 %v2541_v21, %v1011_v22  ;;  %v2606_v23 = vand.u32 127, %v1047_v20 }
 0x241   : > { %1049 = vmin.xlane.f32.xlu0 %v2547_v25 }
 0x242   : > { %v950_v26 = vpop.f32.mrf.mxu3 }
 0x243   : > { %v996_v27 = vmul.f32 2.0, %v950_v26 }
 0x244   : > { %v889_v47 = vpop.xlane.xlu1 %888 }
 0x245   : > { %v1012_v29 = vsub.f32 %v885_v28, %v996_v27 }
 0x247   : > { %v2557_v33 = vadd.f32 %v2541_v21, %v1012_v29 }
 0x249   : > { %896 = vadd.xlane.f32.xlu0 %v873_v32  ;;  %1051 = vmin.xlane.f32.xlu2 %v2557_v33 }
 0x24a   : > { %v953_v36 = vpop.f32.mrf.mxu3 }
 0x24b   : > { %v997_v37 = vmul.f32 2.0, %v953_v36 }
 0x24c   : > { %v891_v56 = vpop.xlane.xlu2 %890 }
 0x24d   : > { %v1013_v38 = vsub.f32 %v887_v35, %v997_v37 }
 0x24f   : > { %v2565_v44 = vadd.f32 %v2541_v21, %v1013_v38 }
 0x251   : > { %1053 = vmin.xlane.f32.xlu1 %v2565_v44  ;;  %898 = vadd.xlane.f32.xlu2 %v874_v45 }
 0x252   : > { %v956_v46 = vpop.f32.mrf.mxu3 }
 0x253   : > { %v998_v49 = vmul.f32 2.0, %v956_v46 }
 0x254   : > { %v893_v63 = vpop.xlane.xlu2 %892 }
 0x255   : > { %v1014_v50 = vsub.f32 %v889_v47, %v998_v49 }
 0x257   : > { %v2577_v55 = vadd.f32 %v2541_v21, %v1014_v50 }
 0x259   : > { %900 = vadd.xlane.f32.xlu1 %v875_v51  ;;  %1055 = vmin.xlane.f32.xlu0 %v2577_v55 }
 0x25a   : > { %v959_v57 = vpop.f32.mrf.mxu3 }
 0x25b   : > { %v999_v58 = vmul.f32 2.0, %v959_v57 }
 0x25c   : > { %v895_v6 = vpop.xlane.xlu1 %894 }
 0x25d   : > { %v1015_v59 = vsub.f32 %v891_v56, %v999_v58 }
 0x25f   : > { %v2584_v62 = vadd.f32 %v2541_v21, %v1015_v59 }
 0x261   : > { %902 = vadd.xlane.f32.xlu0 %v876_v61  ;;  %1057 = vmin.xlane.f32.xlu2 %v2584_v62 }
 0x262   : > { %v962_v39 = vpop.f32.mrf.mxu3 }
 0x263   : > { %v1000_v0 = vmul.f32 2.0, %v962_v39 }
 0x265   : > { %v1016_v1 = vsub.f32 %v893_v63, %v1000_v0 }
 0x267   : > { %v2590_v4 = vadd.f32 %v2541_v21, %v1016_v1 }
 0x269   : > { %1059 = vmin.xlane.f32.xlu1 %v2590_v4  ;;  %904 = vadd.xlane.f32.xlu2 %v877_v3 }
 0x26a   : > { %v965_v5 = vpop.f32.mrf.mxu3 }
 0x26b   : > { %v1001_v8 = vmul.f32 2.0, %v965_v5 }
 0x26d   : > { %v1017_v9 = vsub.f32 %v895_v6, %v1001_v8 }
 0x26f   : > { %v2596_v12 = vadd.f32 %v2541_v21, %v1017_v9 }
 0x271   : > { %1061 = vmin.xlane.f32.xlu1 %v2596_v12  ;;  %906 = vadd.xlane.f32.xlu2 %v878_v10 }
 0x272   : > { %v968_v19 = vpop.f32.mrf.mxu3 }
 0x273   : > { %v1002_v29 = vmul.f32 2.0, %v968_v19 }
 0x279   : > { %908 = vadd.xlane.f32.xlu2 %v879_v14 }
 0x27a   : > { %v971_v22 = vpop.f32.mrf.mxu3 }
 0x27b   : > { %v1003_v45 = vmul.f32 2.0, %v971_v22 }
 0x281   : > { %910 = vadd.xlane.f32.xlu2 %v880_v16 }
 0x282   : > { %v974_v32 = vpop.f32.mrf.mxu3 }
 0x283   : > { %v1004_v57 = vmul.f32 2.0, %v974_v32 }
 0x289   : > { %912 = vadd.xlane.f32.xlu2 %v881_v18 }
 0x28a   : > { %v977_v51 = vpop.f32.mrf.mxu3 }
 0x28b   : > { %v1005_v3 = vmul.f32 2.0, %v977_v51 }
 0x292   : > { %v980_v63 = vpop.f32.mrf.mxu3 }
 0x293   : > { %v1006_v19 = vmul.f32 2.0, %v980_v63 }
 0x29a   : > { %v983_v16 = vpop.f32.mrf.mxu3 }
 0x2b4   : > { %v1050_v26 = vpop.xlane.xlu0 %1049 }
 0x2b5   : > { %vm1081_vm0 = vcmp.eq.f32.partialorder %v2547_v25, %v1050_v26 }
 0x2b6   : > { %v2610_v27 = vsel %vm1081_vm0, %v2606_v23, 128 }
 0x2b7   : > { %v1114_v28 = vshra.s32 %v2610_v27, 16 }
 0x2b9   : > { %v2613_v30 = vcvt.s32.f32 %v1114_v28 }
 0x2bb   : > { %1117 = vmin.xlane.f32.xlu0 %v2613_v30 }
 0x2bc   : > { %v1052_v35 = vpop.xlane.xlu2 %1051  ;;  %v897_v36 = vpop.xlane.xlu0 %896 }
 0x2bd   : > { %vm1082_vm1 = vcmp.eq.f32.partialorder %v2557_v33, %v1052_v35  ;;  %v1018_v37 = vsub.f32 %v897_v36, %v1002_v29  ;;  %v1007_v36 = vmul.f32 2.0, %v983_v16 }
 0x2be   : > { %v2618_v38 = vsel %vm1082_vm1, %v2606_v23, 128 }
 0x2bf   : > { %v2621_v25 = vadd.f32 %v2541_v21, %v1018_v37  ;;  %v1128_v40 = vshra.s32 %v2618_v38, 16  ;;  %v986_v37 = vpop.f32.mrf.mxu3 }
 0x2c1   : > { %1063 = vmin.xlane.f32.xlu1 %v2621_v25  ;;  %v2625_v46 = vcvt.s32.f32 %v1128_v40 }
 0x2c3   : > { %1131 = vmin.xlane.f32.xlu0 %v2625_v46 }
 0x2c4   : > { %v1054_v47 = vpop.xlane.xlu1 %1053  ;;  %v899_v49 = vpop.xlane.xlu2 %898 }
 0x2c5   : > { %vm1083_vm2 = vcmp.eq.f32.partialorder %v2565_v44, %v1054_v47  ;;  %v1019_v33 = vsub.f32 %v899_v49, %v1003_v45 }
 0x2c6   : > { %v2630_v50 = vsel %vm1083_vm2, %v2606_v23, 128 }
 0x2c7   : > { %v2633_v52 = vadd.f32 %v2541_v21, %v1019_v33  ;;  %v1142_v56 = vshra.s32 %v2630_v50, 16 }
 0x2c9   : > { %1065 = vmin.xlane.f32.xlu1 %v2633_v52  ;;  %v2637_v58 = vcvt.s32.f32 %v1142_v56  ;;  %v1008_v56 = vmul.f32 2.0, %v986_v37 }
 0x2cb   : > { %1145 = vmin.xlane.f32.xlu0 %v2637_v58 }
 0x2cc   : > { %v901_v59 = vpop.xlane.xlu1 %900  ;;  %v1056_v61 = vpop.xlane.xlu0 %1055 }
 0x2cd   : > { %v1020_v44 = vsub.f32 %v901_v59, %v1004_v57  ;;  %vm1084_vm3 = vcmp.eq.f32.partialorder %v2577_v55, %v1056_v61  ;;  %v989_v59 = vpop.f32.mrf.mxu3 }
 0x2ce   : > { %v2642_v39 = vsel %vm1084_vm3, %v2606_v23, 128 }
 0x2cf   : > { %v2645_v0 = vadd.f32 %v2541_v21, %v1020_v44  ;;  %v1156_v1 = vshra.s32 %v2642_v39, 16  ;;  %v1009_v44 = vmul.f32 2.0, %v989_v59 }
 0x2d1   : > { %1067 = vmin.xlane.f32.xlu1 %v2645_v0  ;;  %v2649_v5 = vcvt.s32.f32 %v1156_v1 }
 0x2d3   : > { %1159 = vmin.xlane.f32.xlu0 %v2649_v5 }
 0x2d4   : > { %v1058_v6 = vpop.xlane.xlu2 %1057  ;;  %v903_v8 = vpop.xlane.xlu0 %902 }
 0x2d5   : > { %vm1085_vm4 = vcmp.eq.f32.partialorder %v2584_v62, %v1058_v6  ;;  %v1021_v55 = vsub.f32 %v903_v8, %v1005_v3  ;;  %v992_v3 = vpop.f32.mrf.mxu3 }
 0x2d6   : > { %v2654_v9 = vsel %vm1085_vm4, %v2606_v23, 128  ;;  %v1010_v8 = vmul.f32 2.0, %v992_v3 }
 0x2d7   : > { %v2657_v10 = vadd.f32 %v2541_v21, %v1021_v55  ;;  %v1170_v14 = vshra.s32 %v2654_v9, 16 }
 0x2d9   : > { %1069 = vmin.xlane.f32.xlu1 %v2657_v10  ;;  %v2661_v18 = vcvt.s32.f32 %v1170_v14 }
 0x2db   : > { %1173 = vmin.xlane.f32.xlu0 %v2661_v18 }
 0x2dc   : > { %v1060_v22 = vpop.xlane.xlu1 %1059  ;;  %v905_v26 = vpop.xlane.xlu2 %904 }
 0x2dd   : > { %vm1086_vm5 = vcmp.eq.f32.partialorder %v2590_v4, %v1060_v22  ;;  %v1022_v62 = vsub.f32 %v905_v26, %v1006_v19  ;;  %v1113_v19 = vand.u32 65535, %v2610_v27 }
 0x2de   : > { %v2666_v28 = vsel %vm1086_vm5, %v2606_v23, 128 }
 0x2df   : > { %v1184_v29 = vshra.s32 %v2666_v28, 16  ;;  %v2670_v32 = vadd.f32 %v2541_v21, %v1022_v62  ;;  %v1115_v26 = vcvt.s32.f32 %v1113_v19 }
 0x2e1   : > { %v2672_v35 = vcvt.s32.f32 %v1184_v29  ;;  %v1127_v29 = vand.u32 65535, %v2618_v38  ;;  %v1141_v38 = vand.u32 65535, %v2630_v50  ;;  %v1155_v50 = vand.u32 65535, %v2642_v39 }
 0x2e2   : > { %v1169_v39 = vand.u32 65535, %v2654_v9  ;;  %v1183_v9 = vand.u32 65535, %v2666_v28  ;;  %v1400_v28 = vld [vmem:[%s3331_s7 + $0x78] sm:$0xff] }
 0x2e3   : > { %1187 = vmin.xlane.f32.xlu2 %v2672_v35  ;;  %1071 = vmin.xlane.f32.xlu0 %v2670_v32 }
 0x2e4   : > { %v1062_v40 = vpop.xlane.xlu1 %1061  ;;  %v907_v45 = vpop.xlane.xlu2 %906  ;;  %1401 = vmatpush.msrb.mxu0 %v1400_v28 }
 0x2e5   : > { %vm1087_vm6 = vcmp.eq.f32.partialorder %v2596_v12, %v1062_v40  ;;  %v1023_v4 = vsub.f32 %v907_v45, %v1007_v36  ;;  %v1129_v40 = vcvt.s32.f32 %v1127_v29  ;;  %v1185_v29 = vcvt.s32.f32 %v1183_v9  ;;  %v1389_v9 = vld [vmem:[%s3331_s7 + $0x20] sm:$0xff] }
 0x2e6   : > { %v2678_v47 = vsel %vm1087_vm6, %v2606_v23, 128 }
 0x2e7   : > { %v1198_v49 = vshra.s32 %v2678_v47, 16  ;;  %v2682_v33 = vadd.f32 %v2541_v21, %v1023_v4 }
 0x2e9   : > { %v2684_v51 = vcvt.s32.f32 %v1198_v49 }
 0x2eb   : > { %1201 = vmin.xlane.f32.xlu2 %v2684_v51  ;;  %1073 = vmin.xlane.f32.xlu0 %v2682_v33 }
 0x2ec   : > { %v909_v57 = vpop.xlane.xlu2 %908 }
 0x2ed   : > { %v1024_v61 = vsub.f32 %v909_v57, %v1008_v56  ;;  %v1143_v56 = vcvt.s32.f32 %v1141_v38  ;;  %v1397_v38 = vld [vmem:[%s3331_s7 + $0x60] sm:$0xff] }
 0x2ef   : > { %v2689_v12 = vadd.f32 %v2541_v21, %v1024_v61 }
 0x2f3   : > { %1075 = vmin.xlane.f32.xlu0 %v2689_v12 }
 0x2f4   : > { %v911_v63 = vpop.xlane.xlu2 %910 }
 0x2f5   : > { %v1025_v1 = vsub.f32 %v911_v63, %v1009_v44  ;;  %v1157_v63 = vcvt.s32.f32 %v1155_v50 }
 0x2f7   : > { %v2693_v6 = vadd.f32 %v2541_v21, %v1025_v1 }
 0x2fb   : > { %1077 = vmin.xlane.f32.xlu0 %v2693_v6 }
 0x2fc   : > { %v913_v55 = vpop.xlane.xlu2 %912 }
 0x2fd   : > { %v1026_v14 = vsub.f32 %v913_v55, %v1010_v8 }
 0x2ff   : > { %v2697_v16 = vadd.f32 %v2541_v21, %v1026_v14  ;;  %v1171_v14 = vcvt.s32.f32 %v1169_v39  ;;  %v1392_v39 = vld [vmem:[%s3331_s7 + $0x38] sm:$0xff] }
 0x303   : > { %1079 = vmin.xlane.f32.xlu0 %v2697_v16 }
 0x32e   : > { %v2701_v22 = vpop.xlane.xlu0 %1117 }
 0x32f   : > { %vm1119_vm7 = vcmp.eq.f32.partialorder %v2613_v30, %v2701_v22  ;;  %v1124_v28 = vcvt.f32.s32 %v2701_v22 }
 0x330   : > { %v1120_v62 = vsel %vm1119_vm7, %v1115_v26, inf }
 0x331   : > { %1121 = vmin.xlane.f32.xlu1 %v1120_v62 }
 0x334   : > { %v1064_v36 = vpop.xlane.xlu1 %1063 }
 0x335   : > { %vm1088_vm8 = vcmp.eq.f32.partialorder %v2621_v25, %v1064_v36 }
 0x336   : > { %v2708_v21 = vsel %vm1088_vm8, %v2606_v23, 128  ;;  %v2710_v37 = vpop.xlane.xlu0 %1131 }
 0x337   : > { %vm1133_vm9 = vcmp.eq.f32.partialorder %v2625_v46, %v2710_v37  ;;  %v1212_v27 = vshra.s32 %v2708_v21, 16 }
 0x338   : > { %v1134_v45 = vsel %vm1133_vm9, %v1129_v40, inf }
 0x339   : > { %1135 = vmin.xlane.f32.xlu1 %v1134_v45  ;;  %v2715_v30 = vcvt.s32.f32 %v1212_v27  ;;  %v1399_v27 = vld [vmem:[%s3331_s7 + $0x70] sm:$0xff] }
 0x33a   : > { %1402 = vmatpush.msrb.mxu0 %v1399_v27 }
 0x33b   : > { %1215 = vmin.xlane.f32.xlu2 %v2715_v30 }
 0x33c   : > { %v1066_v25 = vpop.xlane.xlu1 %1065 }
 0x33d   : > { %vm1089_vm10 = vcmp.eq.f32.partialorder %v2633_v52, %v1066_v25 }
 0x33e   : > { %v2721_v4 = vsel %vm1089_vm10, %v2606_v23, 128  ;;  %v2723_v49 = vpop.xlane.xlu0 %1145 }
 0x33f   : > { %vm1147_vm11 = vcmp.eq.f32.partialorder %v2637_v58, %v2723_v49  ;;  %v1226_v46 = vshra.s32 %v2721_v4, 16 }
 0x340   : > { %v1148_v57 = vsel %vm1147_vm11, %v1143_v56, inf }
 0x341   : > { %1149 = vmin.xlane.f32.xlu1 %v1148_v57  ;;  %v2728_v59 = vcvt.s32.f32 %v1226_v46 }
 0x343   : > { %1229 = vmin.xlane.f32.xlu2 %v2728_v59 }
 0x344   : > { %v1068_v52 = vpop.xlane.xlu1 %1067 }
 0x345   : > { %vm1090_vm12 = vcmp.eq.f32.partialorder %v2645_v0, %v1068_v52 }
 0x346   : > { %v2734_v61 = vsel %vm1090_vm12, %v2606_v23, 128  ;;  %v2736_v44 = vpop.xlane.xlu0 %1159 }
 0x347   : > { %vm1161_vm13 = vcmp.eq.f32.partialorder %v2649_v5, %v2736_v44  ;;  %v1240_v58 = vshra.s32 %v2734_v61, 16 }
 0x348   : > { %v1162_v1 = vsel %vm1161_vm13, %v1157_v63, inf  ;;  %v1395_v63 = vld [vmem:[%s3331_s7 + $0x50] sm:$0xff] }
 0x349   : > { %1163 = vmin.xlane.f32.xlu1 %v1162_v1  ;;  %v2741_v3 = vcvt.s32.f32 %v1240_v58  ;;  %v1393_v58 = vld [vmem:[%s3331_s7 + $0x40] sm:$0xff] }
 0x34b   : > { %1243 = vmin.xlane.f32.xlu2 %v2741_v3 }
 0x34c   : > { %v1070_v0 = vpop.xlane.xlu1 %1069 }
 0x34d   : > { %vm1091_vm14 = vcmp.eq.f32.partialorder %v2657_v10, %v1070_v0 }
 0x34e   : > { %v2747_v8 = vsel %vm1091_vm14, %v2606_v23, 128  ;;  %v2749_v55 = vpop.xlane.xlu0 %1173 }
 0x34f   : > { %vm1175_vm15 = vcmp.eq.f32.partialorder %v2661_v18, %v2749_v55  ;;  %v1254_v5 = vshra.s32 %v2747_v8, 16 }
 0x350   : > { %v1176_v19 = vsel %vm1175_vm15, %v1171_v14, inf }
 0x351   : > { %1177 = vmin.xlane.f32.xlu1 %v1176_v19  ;;  %v2754_v26 = vcvt.s32.f32 %v1254_v5  ;;  %v1391_v5 = vld [vmem:[%s3331_s7 + $0x30] sm:$0xff] }
 0x353   : > { %1257 = vmin.xlane.f32.xlu2 %v2754_v26 }
 0x356   : > { %v2758_v10 = vpop.xlane.xlu2 %1187  ;;  %v1072_v62 = vpop.xlane.xlu0 %1071 }
 0x357   : > { %vm1092_vm0 = vcmp.eq.f32.partialorder %v2670_v32, %v1072_v62  ;;  %vm1189_vm1 = vcmp.eq.f32.partialorder %v2672_v35, %v2758_v10  ;;  %v1197_v32 = vand.u32 65535, %v2678_v47  ;;  %v1398_v35 = vld [vmem:[%s3331_s7 + $0x68] sm:$0xff]  ;;  %v1396_v47 = vld [vmem:[%s3331_s7 + $0x58] sm:$0xff] }
 0x358   : > { %v2764_v18 = vsel %vm1092_vm0, %v2606_v23, 128  ;;  %v1190_v36 = vsel %vm1189_vm1, %v1185_v29, inf  ;;  %1403 = vmatpush.msrb.mxu0 %v1398_v35  ;;  %v1388_v62 = vld [vmem:[%s3331_s7 + $0x18] sm:$0xff]  ;;  %v1387_v29 = vld [vmem:[%s3331_s7 + $0x10] sm:$0xff] }
 0x359   : > { %1191 = vmin.xlane.f32.xlu0 %v1190_v36  ;;  %v1268_v40 = vshra.s32 %v2764_v18, 16  ;;  %v1199_v46 = vcvt.s32.f32 %v1197_v32  ;;  %v1386_v36 = vld [vmem:[%s3331_s7 + $0x8] sm:$0xff]  ;;  %v1125_v32 = vshll.u32 %v1124_v28, 16  ;;  %v1166_v28 = vcvt.f32.s32 %v2736_v44 }
 0x35a   : > { %1404 = vmatpush.msrb.mxu0 %v1397_v38 }
 0x35b   : > { %v2774_v45 = vcvt.s32.f32 %v1268_v40  ;;  %v1385_v40 = vld [vmem:[%s3331_s7] sm:$0xff] }
 0x35c   : > { %1405 = vmatpush.msrb.mxu0 %v1396_v47  ;;  %v1211_v47 = vand.u32 65535, %v2708_v21  ;;  %v1152_v21 = vcvt.f32.s32 %v2723_v49 }
 0x35d   : > { %1271 = vmin.xlane.f32.xlu1 %v2774_v45 }
 0x35e   : > { %v2783_v25 = vpop.xlane.xlu2 %1201  ;;  %v1074_v56 = vpop.xlane.xlu0 %1073  ;;  %1406 = vmatpush.msrb.mxu0 %v1395_v63 }
 0x35f   : > { %vm1093_vm2 = vcmp.eq.f32.partialorder %v2682_v33, %v1074_v56  ;;  %vm1203_vm3 = vcmp.eq.f32.partialorder %v2684_v51, %v2783_v25  ;;  %v1394_v51 = vld [vmem:[%s3331_s7 + $0x48] sm:$0xff] }
 0x360   : > { %v2792_v57 = vsel %vm1093_vm2, %v2606_v23, 128  ;;  %v1204_v50 = vsel %vm1203_vm3, %v1199_v46, inf  ;;  %1407 = vmatpush.msrb.mxu0 %v1394_v51  ;;  %v1138_v46 = vcvt.f32.s32 %v2710_v37 }
 0x361   : > { %1205 = vmin.xlane.f32.xlu2 %v1204_v50  ;;  %v1282_v52 = vshra.s32 %v2792_v57, 16  ;;  %v2108_v50 = vmov 1.0  }
 0x362   : > { %1408 = vmatpush.msrb.mxu0 %v1393_v58  ;;  %v1139_v63 = vshll.u32 %v1138_v46, 16  ;;  %v1213_v58 = vcvt.s32.f32 %v1211_v47 }
 0x363   : > { %v2798_v33 = vcvt.s32.f32 %v1282_v52 }
 0x364   : > { %1409 = vmatpush.msrb.mxu0 %v1392_v39 }
 0x365   : > { %1285 = vmin.xlane.f32.xlu0 %v2798_v33 }
 0x366   : > { %v1076_v1 = vpop.xlane.xlu0 %1075  ;;  %1410 = vmatpush.msrb.mxu0 %v1391_v5 }
 0x367   : > { %vm1094_vm4 = vcmp.eq.f32.partialorder %v2689_v12, %v1076_v1  ;;  %v1390_v12 = vld [vmem:[%s3331_s7 + $0x28] sm:$0xff] }
 0x368   : > { %v2812_v0 = vsel %vm1094_vm4, %v2606_v23, 128  ;;  %1411 = vmatpush.msrb.mxu0 %v1390_v12 }
 0x369   : > { %v1296_v14 = vshra.s32 %v2812_v0, 16 }
 0x36a   : > { %1412 = vmatpush.msrb.mxu0 %v1389_v9  ;;  %v1153_v9 = vshll.u32 %v1152_v21, 16 }
 0x36b   : > { %v2818_v19 = vcvt.s32.f32 %v1296_v14  ;;  %v1225_v14 = vand.u32 65535, %v2721_v4 }
 0x36c   : > { %1413 = vmatpush.msrb.mxu0 %v1388_v62 }
 0x36d   : > { %1299 = vmin.xlane.f32.xlu2 %v2818_v19 }
 0x36e   : > { %1414 = vmatpush.msrb.mxu0 %v1387_v29  ;;  %v1078_v56 = vpop.xlane.xlu0 %1077  ;;  %v1227_v29 = vcvt.s32.f32 %v1225_v14  ;;  %v1642_v14 = vld [vmem:[%s3334_s10 + $0x60] sm:$0xff] }
 0x36f   : > { %vm1095_vm6 = vcmp.eq.f32.partialorder %v2693_v6, %v1078_v56 }
 0x370   : > { %1415 = vmatpush.msrb.mxu0 %v1386_v36  ;;  %v2850_v37 = vsel %vm1095_vm6, %v2606_v23, 128 }
 0x371   : > { %v1310_v5 = vshra.s32 %v2850_v37, 16 }
 0x372   : > { %1416 = vmatpush.msrb.mxu0 %v1385_v40 }
 0x373   : > { %v2862_v49 = vcvt.s32.f32 %v1310_v5  ;;  %v1194_v5 = vcvt.f32.s32 %v2758_v10 }
 0x376   : > { %v1080_v6 = vpop.xlane.xlu0 %1079 }
 0x377   : > { %vm1096_vm9 = vcmp.eq.f32.partialorder %v2697_v16, %v1080_v6  ;;  %v1239_v16 = vand.u32 65535, %v2734_v61  ;;  %v1253_v61 = vand.u32 65535, %v2747_v8 }
 0x378   : > { %v2865_v4 = vsel %vm1096_vm9, %v2606_v23, 128 }
 0x379   : > { %v1241_v56 = vcvt.s32.f32 %v1239_v16  ;;  %v1255_v8 = vcvt.s32.f32 %v1253_v61  ;;  %v1634_v61 = vld [vmem:[%s3334_s10 + $0x20] sm:$0xff] }
 0x3a4   : > { %v1122_v27 = vpop.xlane.xlu1 %1121 }
 0x3a5   : > { %v1123_v35 = vcvt.f32.s32 %v1122_v27  ;;  %v1324_v27 = vshra.s32 %v2865_v4, 16 }
 0x3a7   : > { %v1126_v38 = vadd.s32 %v1125_v32, %v1123_v35  ;;  %v1167_v32 = vshll.u32 %v1166_v28, 16  ;;  %v2877_v44 = vcvt.s32.f32 %v1324_v27  ;;  %v1638_v28 = vld [vmem:[%s3334_s10 + $0x40] sm:$0xff] }
 0x3a9   : > { %vm1337_vm5 = vcmp.eq.s32.totalorder %v2606_v23, %v1126_v38 }
 0x3aa   : > { %2046 = vmatmul.msk.f32.vlgmr.msrb.gmra.mxu0 %vm1337_vm5, %v2108_v50 }
 0x3ac   : > { %v1136_v52 = vpop.xlane.xlu1 %1135 }
 0x3ad   : > { %v1137_v51 = vcvt.f32.s32 %v1136_v52  ;;  %v1180_v52 = vcvt.f32.s32 %v2749_v55 }
 0x3ae   : > { %v2845_v22 = vpop.xlane.xlu2 %1215 }
 0x3af   : > { %v1140_v1 = vadd.s32 %v1139_v63, %v1137_v51  ;;  %vm1217_vm7 = vcmp.eq.f32.partialorder %v2715_v30, %v2845_v22  ;;  %v1645_v63 = vld [vmem:[%s3334_s10 + $0x78] sm:$0xff]  ;;  %v1181_v55 = vshll.u32 %v1180_v52, 16 }
 0x3b0   : > { %v1218_v39 = vsel %vm1217_vm7, %v1213_v58, inf  ;;  %1650 = vmatpush.msrb.mxu2 %v1645_v63 }
 0x3b1   : > { %1219 = vmin.xlane.f32.xlu1 %v1218_v39  ;;  %vm1338_vm8 = vcmp.eq.s32.totalorder %v2606_v23, %v1140_v1  ;;  %v1643_v1 = vld [vmem:[%s3334_s10 + $0x68] sm:$0xff] }
 0x3b2   : > { %2047 = vmatmul.msk.f32.gmra.mxu0 %vm1338_vm8, %v2108_v50 }
 0x3b4   : > { %v1150_v12 = vpop.xlane.xlu1 %1149 }
 0x3b5   : > { %v1151_v30 = vcvt.f32.s32 %v1150_v12  ;;  %v1641_v12 = vld [vmem:[%s3334_s10 + $0x58] sm:$0xff] }
 0x3b6   : > { %v2858_v62 = vpop.xlane.xlu2 %1229 }
 0x3b7   : > { %v1154_v36 = vadd.s32 %v1153_v9, %v1151_v30  ;;  %vm1231_vm10 = vcmp.eq.f32.partialorder %v2728_v59, %v2858_v62  ;;  %v1267_v9 = vand.u32 65535, %v2764_v18  ;;  %v1208_v18 = vcvt.f32.s32 %v2783_v25 }
 0x3b8   : > { %v1232_v40 = vsel %vm1231_vm10, %v1227_v29, inf  ;;  %v1195_v29 = vshll.u32 %v1194_v5, 16  ;;  %v1281_v25 = vand.u32 65535, %v2792_v57  ;;  %v1633_v57 = vld [vmem:[%s3334_s10 + $0x18] sm:$0xff] }
 0x3b9   : > { %1233 = vmin.xlane.f32.xlu0 %v1232_v40  ;;  %1313 = vmin.xlane.f32.xlu1 %v2862_v49  ;;  %vm1339_vm11 = vcmp.eq.s32.totalorder %v2606_v23, %v1154_v36  ;;  %v1639_v36 = vld [vmem:[%s3334_s10 + $0x48] sm:$0xff]  ;;  %v1269_v27 = vcvt.s32.f32 %v1267_v9 }
 0x3ba   : > { %2048 = vmatmul.msk.f32.gmra.mxu0 %vm1339_vm11, %v2108_v50 }
 0x3bc   : > { %v1164_v59 = vpop.xlane.xlu1 %1163 }
 0x3bd   : > { %v1165_v35 = vcvt.f32.s32 %v1164_v59  ;;  %v1637_v59 = vld [vmem:[%s3334_s10 + $0x38] sm:$0xff] }
 0x3be   : > { %v2873_v38 = vpop.xlane.xlu2 %1243 }
 0x3bf   : > { %v1168_v46 = vadd.s32 %v1167_v32, %v1165_v35  ;;  %vm1245_vm12 = vcmp.eq.f32.partialorder %v2741_v3, %v2873_v38  ;;  %v1644_v3 = vld [vmem:[%s3334_s10 + $0x70] sm:$0xff] }
 0x3c0   : > { %v1246_v47 = vsel %vm1245_vm12, %v1241_v56, inf  ;;  %1651 = vmatpush.msrb.mxu2 %v1644_v3  ;;  %v1636_v35 = vld [vmem:[%s3334_s10 + $0x30] sm:$0xff]  ;;  %v1283_v3 = vcvt.s32.f32 %v1281_v25 }
 0x3c1   : > { %1247 = vmin.xlane.f32.xlu2 %v1246_v47  ;;  %1327 = vmin.xlane.f32.xlu0 %v2877_v44  ;;  %vm1340_vm13 = vcmp.eq.s32.totalorder %v2606_v23, %v1168_v46  ;;  %v1209_v46 = vshll.u32 %v1208_v18, 16  ;;  %v1250_v18 = vcvt.f32.s32 %v2873_v38 }
 0x3c2   : > { %2049 = vmatmul.msk.f32.gmra.mxu0 %vm1340_vm13, %v2108_v50  ;;  %1652 = vmatpush.msrb.mxu2 %v1643_v1 }
 0x3c4   : > { %v1178_v51 = vpop.xlane.xlu1 %1177  ;;  %1653 = vmatpush.msrb.mxu2 %v1642_v14  ;;  %v1630_v14 = vld [vmem:[%s3334_s10] sm:$0xff] }
 0x3c5   : > { %v1179_v58 = vcvt.f32.s32 %v1178_v51 }
 0x3c6   : > { %v2893_v39 = vpop.xlane.xlu2 %1257  ;;  %1654 = vmatpush.msrb.mxu2 %v1641_v12 }
 0x3c7   : > { %v1182_v21 = vadd.s32 %v1181_v55, %v1179_v58  ;;  %vm1259_vm14 = vcmp.eq.f32.partialorder %v2754_v26, %v2893_v39  ;;  %v1640_v26 = vld [vmem:[%s3334_s10 + $0x50] sm:$0xff]  ;;  %v1295_v58 = vand.u32 65535, %v2812_v0  ;;  %v1222_v0 = vcvt.f32.s32 %v2845_v22 }
 0x3c8   : > { %v1260_v6 = vsel %vm1259_vm14, %v1255_v8, inf  ;;  %1655 = vmatpush.msrb.mxu2 %v1640_v26  ;;  %v1632_v55 = vld [vmem:[%s3334_s10 + $0x10] sm:$0xff]  ;;  %v1264_v38 = vcvt.f32.s32 %v2893_v39  ;;  %v1744_v39 = vld [vmem:[%s3336_s12 + $0x68] sm:$0xff] }
 0x3c9   : > { %1261 = vmin.xlane.f32.xlu1 %v1260_v6  ;;  %vm1341_vm15 = vcmp.eq.s32.totalorder %v2606_v23, %v1182_v21  ;;  %v1631_v21 = vld [vmem:[%s3334_s10 + $0x8] sm:$0xff]  ;;  %v1223_v5 = vshll.u32 %v1222_v0, 16 }
 0x3ca   : > { %2050 = vmatmul.msk.f32.gmra.mxu0 %vm1341_vm15, %v2108_v50  ;;  %1656 = vmatpush.msrb.mxu2 %v1639_v36 }
 0x3cc   : > { %v1192_v30 = vpop.xlane.xlu0 %1191  ;;  %1657 = vmatpush.msrb.mxu2 %v1638_v28 }
 0x3cd   : > { %v1193_v10 = vcvt.f32.s32 %v1192_v30  ;;  %v1236_v30 = vcvt.f32.s32 %v2858_v62  ;;  %v1323_v62 = vand.u32 65535, %v2865_v4 }
 0x3ce   : > { %1658 = vmatpush.msrb.mxu2 %v1637_v59 }
 0x3cf   : > { %v1196_v40 = vadd.s32 %v1195_v29, %v1193_v10  ;;  %v1237_v36 = vshll.u32 %v1236_v30, 16 }
 0x3d0   : > { %v2916_v16 = vpop.xlane.xlu1 %1271  ;;  %1659 = vmatpush.msrb.mxu2 %v1636_v35  ;;  %v1325_v35 = vcvt.s32.f32 %v1323_v62 }
 0x3d1   : > { %vm1342_vm0 = vcmp.eq.s32.totalorder %v2606_v23, %v1196_v40  ;;  %vm1273_vm1 = vcmp.eq.f32.partialorder %v2774_v45, %v2916_v16  ;;  %v1635_v45 = vld [vmem:[%s3334_s10 + $0x28] sm:$0xff] }
 0x3d2   : > { %2051 = vmatmul.msk.f32.gmra.mxu0 %vm1342_vm0, %v2108_v50  ;;  %v1274_v32 = vsel %vm1273_vm1, %v1269_v27, inf  ;;  %1660 = vmatpush.msrb.mxu2 %v1635_v45  ;;  %v1746_v45 = vld [vmem:[%s3336_s12 + $0x78] sm:$0xff] }
 0x3d3   : > { %1275 = vmin.xlane.f32.xlu2 %v1274_v32  ;;  %1751 = vmatpush.msrb.mxu3 %v1746_v45 }
 0x3d4   : > { %v1206_v56 = vpop.xlane.xlu2 %1205  ;;  %1661 = vmatpush.msrb.mxu2 %v1634_v61 }
 0x3d5   : > { %v1207_v47 = vcvt.f32.s32 %v1206_v56 }
 0x3d6   : > { %1662 = vmatpush.msrb.mxu2 %v1633_v57 }
 0x3d7   : > { %v1210_v52 = vadd.s32 %v1209_v46, %v1207_v47 }
 0x3d8   : > { %v2936_v63 = vpop.xlane.xlu0 %1285  ;;  %1663 = vmatpush.msrb.mxu2 %v1632_v55  ;;  %v1742_v55 = vld [vmem:[%s3336_s12 + $0x58] sm:$0xff] }
 0x3d9   : > { %vm1343_vm2 = vcmp.eq.s32.totalorder %v2606_v23, %v1210_v52  ;;  %vm1287_vm3 = vcmp.eq.f32.partialorder %v2798_v33, %v2936_v63  ;;  %v1297_v33 = vcvt.s32.f32 %v1295_v58  ;;  %v1265_v52 = vshll.u32 %v1264_v38, 16 }
 0x3da   : > { %2052 = vmatmul.msk.f32.gmra.mxu0 %vm1343_vm2, %v2108_v50  ;;  %v1288_v51 = vsel %vm1287_vm3, %v1283_v3, inf  ;;  %1664 = vmatpush.msrb.mxu2 %v1631_v21  ;;  %v1278_v58 = vcvt.f32.s32 %v2916_v16  ;;  %v1740_v21 = vld [vmem:[%s3336_s12 + $0x48] sm:$0xff]  ;;  %v1739_v16 = vld [vmem:[%s3336_s12 + $0x40] sm:$0xff] }
 0x3db   : > { %1289 = vmin.xlane.f32.xlu0 %v1288_v51  ;;  %v1743_v51 = vld [vmem:[%s3336_s12 + $0x60] sm:$0xff] }
 0x3dc   : > { %1665 = vmatpush.msrb.mxu2 %v1630_v14  ;;  %v1279_v14 = vshll.u32 %v1278_v58, 16 }
 0x3e0   : > { %v2949_v1 = vpop.xlane.xlu2 %1299 }
 0x3e1   : > { %vm1301_vm4 = vcmp.eq.f32.partialorder %v2818_v19, %v2949_v1  ;;  %v1309_v19 = vand.u32 65535, %v2850_v37 }
 0x3e2   : > { %v1302_v8 = vsel %vm1301_vm4, %v1297_v33, inf  ;;  %v1741_v33 = vld [vmem:[%s3336_s12 + $0x50] sm:$0xff] }
 0x3e3   : > { %1303 = vmin.xlane.f32.xlu1 %v1302_v8  ;;  %v1311_v22 = vcvt.s32.f32 %v1309_v19 }
 0x424   : > { %v1220_v6 = vpop.xlane.xlu1 %1219 }
 0x425   : > { %v1221_v12 = vcvt.f32.s32 %v1220_v6 }
 0x427   : > { %v1224_v26 = vadd.s32 %v1223_v5, %v1221_v12  ;;  %v2960_v9 = vpop.f32.mrf.mxu0  ;;  %v1738_v12 = vld [vmem:[%s3336_s12 + $0x38] sm:$0xff] }
 0x428   : > { %1666 = vmatmul.f32.vlgmr.msrb.gmra.mxu2 %v2960_v9 }
 0x429   : > { %vm1344_vm5 = vcmp.eq.s32.totalorder %v2606_v23, %v1224_v26  ;;  %v1292_v26 = vcvt.f32.s32 %v2936_v63 }
 0x42a   : > { %2053 = vmatmul.msk.f32.gmra.mxu0 %vm1344_vm5, %v2108_v50 }
 0x42b   : > { %v1293_v30 = vshll.u32 %v1292_v26, 16 }
 0x42c   : > { %v2967_v29 = vpop.xlane.xlu1 %1313  ;;  %v1234_v10 = vpop.xlane.xlu0 %1233 }
 0x42d   : > { %v1235_v40 = vcvt.f32.s32 %v1234_v10  ;;  %vm1315_vm6 = vcmp.eq.f32.partialorder %v2862_v49, %v2967_v29  ;;  %v1251_v49 = vshll.u32 %v1250_v18, 16  ;;  %v1320_v38 = vcvt.f32.s32 %v2967_v29 }
 0x42e   : > { %v1316_v28 = vsel %vm1315_vm6, %v1311_v22, inf }
 0x42f   : > { %v1238_v27 = vadd.s32 %v1237_v36, %v1235_v40  ;;  %v2971_v37 = vpop.f32.mrf.mxu0  ;;  %1317 = vmin.xlane.f32.xlu2 %v1316_v28  ;;  %v1306_v40 = vcvt.f32.s32 %v2949_v1  ;;  %v1737_v1 = vld [vmem:[%s3336_s12 + $0x30] sm:$0xff]  ;;  %v1321_v45 = vshll.u32 %v1320_v38, 16 }
 0x430   : > { %1669 = vmatmul.f32.gmra.mxu2 %v2971_v37 }
 0x431   : > { %vm1345_vm7 = vcmp.eq.s32.totalorder %v2606_v23, %v1238_v27  ;;  %v1307_v28 = vshll.u32 %v1306_v40, 16  ;;  %v1845_v40 = vld [vmem:[%s3338_s14 + $0x68] sm:$0xff] }
 0x432   : > { %2054 = vmatmul.msk.f32.gmra.mxu0 %vm1345_vm7, %v2108_v50 }
 0x434   : > { %v1248_v59 = vpop.xlane.xlu2 %1247  ;;  %v2978_v32 = vpop.xlane.xlu0 %1327 }
 0x435   : > { %v1249_v25 = vcvt.f32.s32 %v1248_v59  ;;  %vm1329_vm8 = vcmp.eq.f32.partialorder %v2877_v44, %v2978_v32  ;;  %v1745_v44 = vld [vmem:[%s3336_s12 + $0x70] sm:$0xff]  ;;  %v1736_v59 = vld [vmem:[%s3336_s12 + $0x28] sm:$0xff] }
 0x436   : > { %v1330_v56 = vsel %vm1329_vm8, %v1325_v35, inf  ;;  %1752 = vmatpush.msrb.mxu3 %v1745_v44  ;;  %v1735_v35 = vld [vmem:[%s3336_s12 + $0x20] sm:$0xff] }
 0x437   : > { %v1252_v46 = vadd.s32 %v1251_v49, %v1249_v25  ;;  %v2982_v4 = vpop.f32.mrf.mxu0  ;;  %1331 = vmin.xlane.f32.xlu0 %v1330_v56  ;;  %v1734_v49 = vld [vmem:[%s3336_s12 + $0x18] sm:$0xff]  ;;  %v1733_v25 = vld [vmem:[%s3336_s12 + $0x10] sm:$0xff]  ;;  %v1732_v56 = vld [vmem:[%s3336_s12 + $0x8] sm:$0xff] }
 0x438   : > { %1672 = vmatmul.f32.gmra.mxu2 %v2982_v4  ;;  %1753 = vmatpush.msrb.mxu3 %v1744_v39 }
 0x439   : > { %vm1346_vm9 = vcmp.eq.s32.totalorder %v2606_v23, %v1252_v46  ;;  %v1731_v46 = vld [vmem:[%s3336_s12] sm:$0xff] }
 0x43a   : > { %2055 = vmatmul.msk.f32.gmra.mxu0 %vm1346_vm9, %v2108_v50  ;;  %1754 = vmatpush.msrb.mxu3 %v1743_v51 }
 0x43c   : > { %v1262_v47 = vpop.xlane.xlu1 %1261  ;;  %1755 = vmatpush.msrb.mxu3 %v1742_v55 }
 0x43d   : > { %v1263_v61 = vcvt.f32.s32 %v1262_v47 }
 0x43e   : > { %1756 = vmatpush.msrb.mxu3 %v1741_v33 }
 0x43f   : > { %v1266_v3 = vadd.s32 %v1265_v52, %v1263_v61  ;;  %v2997_v57 = vpop.f32.mrf.mxu0  ;;  %v1334_v61 = vcvt.f32.s32 %v2978_v32 }
 0x440   : > { %1675 = vmatmul.f32.gmra.mxu2 %v2997_v57  ;;  %1757 = vmatpush.msrb.mxu3 %v1740_v21 }
 0x441   : > { %vm1347_vm10 = vcmp.eq.s32.totalorder %v2606_v23, %v1266_v3  ;;  %v3069_v3 = vld [vmem:[%s3335_s11] ss:$0 sm:$0xff]  ;;  %v1335_v51 = vshll.u32 %v1334_v61, 16 }
 0x442   : > { %2056 = vmatmul.msk.f32.gmra.mxu0 %vm1347_vm10, %v2108_v50  ;;  %1758 = vmatpush.msrb.mxu3 %v1739_v16 }
 0x444   : > { %1759 = vmatpush.msrb.mxu3 %v1738_v12 }
 0x446   : > { %v1276_v8 = vpop.xlane.xlu2 %1275  ;;  %1760 = vmatpush.msrb.mxu3 %v1737_v1 }
 0x447   : > { %v1277_v0 = vcvt.f32.s32 %v1276_v8  ;;  %v3015_v6 = vpop.f32.mrf.mxu0 }
 0x448   : > { %1678 = vmatmul.f32.gmra.mxu2 %v3015_v6  ;;  %1761 = vmatpush.msrb.mxu3 %v1736_v59  ;;  %v1842_v59 = vld [vmem:[%s3338_s14 + $0x50] sm:$0xff] }
 0x449   : > { %v1280_v5 = vadd.s32 %v1279_v14, %v1277_v0 }
 0x44a   : > { %1762 = vmatpush.msrb.mxu3 %v1735_v35 }
 0x44b   : > { %vm1348_vm11 = vcmp.eq.s32.totalorder %v2606_v23, %v1280_v5 }
 0x44c   : > { %2057 = vmatmul.msk.f32.gmra.mxu0 %vm1348_vm11, %v2108_v50  ;;  %1763 = vmatpush.msrb.mxu3 %v1734_v49 }
 0x44e   : > { %v1290_v19 = vpop.xlane.xlu0 %1289  ;;  %1764 = vmatpush.msrb.mxu3 %v1733_v25 }
 0x44f   : > { %v1291_v10 = vcvt.f32.s32 %v1290_v19  ;;  %v3027_v22 = vpop.f32.mrf.mxu0 }
 0x450   : > { %1681 = vmatmul.f32.gmra.mxu2 %v3027_v22  ;;  %1765 = vmatpush.msrb.mxu3 %v1732_v56 }
 0x451   : > { %v1294_v36 = vadd.s32 %v1293_v30, %v1291_v10  ;;  %v1846_v10 = vld [vmem:[%s3338_s14 + $0x70] sm:$0xff] }
 0x452   : > { %1766 = vmatpush.msrb.mxu3 %v1731_v46 }
 0x453   : > { %vm1349_vm12 = vcmp.eq.s32.totalorder %v2606_v23, %v1294_v36 }
 0x454   : > { %2058 = vmatmul.msk.f32.gmra.mxu0 %vm1349_vm12, %v2108_v50 }
 0x456   : > { %v1304_v63 = vpop.xlane.xlu1 %1303 }
 0x457   : > { %v1305_v27 = vcvt.f32.s32 %v1304_v63  ;;  %v3033_v62 = vpop.f32.mrf.mxu0 }
 0x458   : > { %1684 = vmatmul.f32.gmra.mxu2 %v3033_v62 }
 0x459   : > { %v1308_v18 = vadd.s32 %v1307_v28, %v1305_v27  ;;  %v1844_v28 = vld [vmem:[%s3338_s14 + $0x60] sm:$0xff] }
 0x45b   : > { %vm1350_vm13 = vcmp.eq.s32.totalorder %v2606_v23, %v1308_v18  ;;  %v1843_v18 = vld [vmem:[%s3338_s14 + $0x58] sm:$0xff] }
 0x45c   : > { %2059 = vmatmul.msk.f32.gmra.mxu0 %vm1350_vm13, %v2108_v50 }
 0x4a2   : > { %v1318_v47 = vpop.xlane.xlu2 %1317 }
 0x4a3   : > { %v1319_v44 = vcvt.f32.s32 %v1318_v47 }
 0x4a5   : > { %v1322_v52 = vadd.s32 %v1321_v45, %v1319_v44 }
 0x4a7   : > { %v3061_v39 = vpop.f32.mrf.mxu0  ;;  %vm1351_vm14 = vcmp.eq.s32.totalorder %v2606_v23, %v1322_v52 }
 0x4a8   : > { %2060 = vmatmul.msk.f32.gmra.mxu0 %vm1351_vm14, %v2108_v50  ;;  %1687 = vmatmul.f32.gmra.mxu2 %v3061_v39 }
 0x4aa   : > { %v1332_v29 = vpop.xlane.xlu0 %1331 }
 0x4ab   : > { %v1333_v55 = vcvt.f32.s32 %v1332_v29  ;;  %v1667_v58 = vpop.f32.mrf.mxu2  ;;  %v1841_v29 = vld [vmem:[%s3338_s14 + $0x48] sm:$0xff] }
 0x4ac   : > { %v1668_v33 = vadd.f32 %v3069_v3, %v1667_v58  ;;  %v1838_v58 = vld [vmem:[%s3338_s14 + $0x30] sm:$0xff] }
 0x4ad   : > { %v1336_v32 = vadd.s32 %v1335_v51, %v1333_v55  ;;  %v1840_v51 = vld [vmem:[%s3338_s14 + $0x40] sm:$0xff]  ;;  %v1839_v55 = vld [vmem:[%s3338_s14 + $0x38] sm:$0xff] }
 0x4ae   : > { %v1715_v8 = vmax.f32 %v1668_v33, 0.0  ;;  %v1837_v33 = vld [vmem:[%s3338_s14 + $0x28] sm:$0xff] }
 0x4af   : > { %v3072_v21 = vpop.f32.mrf.mxu0  ;;  %vm1352_vm15 = vcmp.eq.s32.totalorder %v2606_v23, %v1336_v32  ;;  %v1847_v23 = vld [vmem:[%s3338_s14 + $0x78] sm:$0xff]  ;;  %v1836_v32 = vld [vmem:[%s3338_s14 + $0x20] sm:$0xff] }
 0x4b0   : > { %2061 = vmatmul.msk.f32.gmra.mxu0 %vm1352_vm15, %v2108_v50  ;;  %1690 = vmatmul.f32.gmra.mxu2 %v3072_v21 }
 0x4b1   : > { %1767 = vmatmul.f32.vlgmr.msrb.gmra.mxu3 %v1715_v8  ;;  %1852 = vmatpush.msrb.mxu1 %v1847_v23  ;;  %v1835_v8 = vld [vmem:[%s3338_s14 + $0x18] sm:$0xff] }
 0x4b3   : > { %v1670_v14 = vpop.f32.mrf.mxu2  ;;  %1853 = vmatpush.msrb.mxu1 %v1846_v10  ;;  %v3153_v10 = vstv %s2062_s29  ;;  %s562_s29 = scalar_lea.vmem %s3341_s17, %s2029_s30 }
 0x4b4   : > { %v1671_v0 = vadd.f32 %v3069_v3, %v1670_v14  ;;  %v1834_v14 = vld [vmem:[%s3338_s14 + $0x10] sm:$0xff] }
 0x4b5   : > { %1854 = vmatpush.msrb.mxu1 %v1845_v40 }
 0x4b6   : > { %v1716_v16 = vmax.f32 %v1671_v0, 0.0  ;;  %v1833_v0 = vld [vmem:[%s3338_s14 + $0x8] sm:$0xff] }
 0x4b7   : > { %v3078_v5 = vpop.f32.mrf.mxu0  ;;  %1855 = vmatpush.msrb.mxu1 %v1844_v28 }
 0x4b8   : > { %1693 = vmatmul.f32.gmra.mxu2 %v3078_v5 }
 0x4b9   : > { %1770 = vmatmul.f32.gmra.mxu3 %v1716_v16  ;;  %1856 = vmatpush.msrb.mxu1 %v1843_v18  ;;  %v1832_v16 = vld [vmem:[%s3338_s14] sm:$0xff] }
 0x4bb   : > { %v1673_v12 = vpop.f32.mrf.mxu2  ;;  %1857 = vmatpush.msrb.mxu1 %v1842_v59 }
 0x4bc   : > { %v1674_v26 = vadd.f32 %v3069_v3, %v1673_v12  ;;  %v3147_v12 = vshrl.u32 %v1047_v20, 7 }
 0x4bd   : > { %1858 = vmatpush.msrb.mxu1 %v1841_v29 }
 0x4be   : > { %v1717_v19 = vmax.f32 %v1674_v26, 0.0  ;;  %v1482_v26 = vadd.s32 112, %v3147_v12  ;;  %v1481_v23 = vadd.s32 104, %v3147_v12  ;;  %v1480_v40 = vadd.s32 96, %v3147_v12 }
 0x4bf   : > { %v3082_v30 = vpop.f32.mrf.mxu0  ;;  %1859 = vmatpush.msrb.mxu1 %v1840_v51  ;;  %v1479_v20 = vadd.s32 88, %v3147_v12  ;;  %v1478_v18 = vadd.s32 80, %v3147_v12 }
 0x4c0   : > { %1696 = vmatmul.f32.gmra.mxu2 %v3082_v30  ;;  %v1497_v59 = vadd.s32 %v3153_v10, %v1480_v40 }
 0x4c1   : > { %1773 = vmatmul.f32.gmra.mxu3 %v1717_v19  ;;  %1860 = vmatpush.msrb.mxu1 %v1839_v55  ;;  %v1483_v19 = vadd.s32 120, %v3147_v12 }
 0x4c2   : > { %vm1513_vm3 = vcmp.lt.s32.totalorder %v1497_v59, 200 }
 0x4c3   : > { %v1676_v36 = vpop.f32.mrf.mxu2  ;;  %1861 = vmatpush.msrb.mxu1 %v1838_v58  ;;  %v1500_v28 = vadd.s32 %v3153_v10, %v1483_v19  ;;  %v3187_v19 = vld [vmem:[%s3337_s13] ss:$0 sm:$0xff] }
 0x4c4   : > { %v1677_v63 = vadd.f32 %v3069_v3, %v1676_v36 }
 0x4c5   : > { %1862 = vmatpush.msrb.mxu1 %v1837_v33  ;;  %vm1516_vm1 = vcmp.lt.s32.totalorder %v1500_v28, 200 }
 0x4c6   : > { %v1718_v27 = vmax.f32 %v1677_v63, 0.0  ;;  %v1499_v63 = vadd.s32 %v3153_v10, %v1482_v26 }
 0x4c7   : > { %1863 = vmatpush.msrb.mxu1 %v1836_v32 }
 0x4c8   : > { %vm1515_vm0 = vcmp.lt.s32.totalorder %v1499_v63, 200 }
 0x4c9   : > { %1776 = vmatmul.f32.gmra.mxu3 %v1718_v27  ;;  %v3101_v1 = vpop.f32.mrf.mxu0  ;;  %1864 = vmatpush.msrb.mxu1 %v1835_v8  ;;  %v1498_v27 = vadd.s32 %v3153_v10, %v1481_v23 }
 0x4ca   : > { %1699 = vmatmul.f32.gmra.mxu2 %v3101_v1 }
 0x4cb   : > { %v1679_v35 = vpop.f32.mrf.mxu2  ;;  %1865 = vmatpush.msrb.mxu1 %v1834_v14  ;;  %vm1514_vm2 = vcmp.lt.s32.totalorder %v1498_v27, 200 }
 0x4cc   : > { %v1680_v49 = vadd.f32 %v3069_v3, %v1679_v35  ;;  %v1477_v35 = vadd.s32 72, %v3147_v12 }
 0x4cd   : > { %1866 = vmatpush.msrb.mxu1 %v1833_v0 }
 0x4ce   : > { %v1719_v25 = vmax.f32 %v1680_v49, 0.0  ;;  %v1494_v32 = vadd.s32 %v3153_v10, %v1477_v35 }
 0x4cf   : > { %1867 = vmatpush.msrb.mxu1 %v1832_v16 }
 0x4d0   : > { %vm1510_vm6 = vcmp.lt.s32.totalorder %v1494_v32, 200 }
 0x4d1   : > { %1779 = vmatmul.f32.gmra.mxu3 %v1719_v25  ;;  %v3108_v56 = vpop.f32.mrf.mxu0  ;;  %v1496_v25 = vadd.s32 %v3153_v10, %v1479_v20  ;;  %v1559_v20 = vsub.f32 %v3082_v30, %v2531_v15  ;;  %v1471_v30 = vadd.s32 24, %v3147_v12 }
 0x4d2   : > { %1702 = vmatmul.f32.gmra.mxu2 %v3108_v56  ;;  %v1561_v14 = vsub.f32 %v3108_v56, %v2544_v24  ;;  %v1560_v24 = vsub.f32 %v3101_v1, %v2535_v17 }
 0x4d3   : > { %v1682_v46 = vpop.f32.mrf.mxu2  ;;  %vm1512_vm4 = vcmp.lt.s32.totalorder %v1496_v25, 200  ;;  %v1558_v25 = vsub.f32 %v3078_v5, %v2527_v13  ;;  %v1470_v5 = vadd.s32 16, %v3147_v12 }
 0x4d4   : > { %v1683_v38 = vadd.f32 %v3069_v3, %v1682_v46 }
 0x4d6   : > { %v1720_v47 = vmax.f32 %v1683_v38, 0.0 }
 0x4d9   : > { %1782 = vmatmul.f32.gmra.mxu3 %v1720_v47  ;;  %v3112_v45 = vpop.f32.mrf.mxu0  ;;  %v1476_v47 = vadd.s32 64, %v3147_v12 }
 0x4da   : > { %1705 = vmatmul.f32.gmra.mxu2 %v3112_v45  ;;  %v1562_v55 = vsub.f32 %v3112_v45, %v2552_v31  ;;  %v1472_v31 = vadd.s32 32, %v3147_v12  ;;  %v1474_v45 = vadd.s32 48, %v3147_v12 }
 0x4db   : > { %v1685_v44 = vpop.f32.mrf.mxu2 }
 0x4dc   : > { %v1686_v52 = vadd.f32 %v3069_v3, %v1685_v44  ;;  %v1495_v44 = vadd.s32 %v3153_v10, %v1478_v18  ;;  %v1491_v1 = vadd.s32 %v3153_v10, %v1474_v45 }
 0x4de   : > { %v1721_v61 = vmax.f32 %v1686_v52, 0.0  ;;  %v2109_v52 = vmov 0.0   ;;  %vm1511_vm5 = vcmp.lt.s32.totalorder %v1495_v44, 200  ;;  %v1557_v44 = vsub.f32 %v3072_v21, %v2523_v11 }
 0x4df   : > { %v2078_v51 = vsel %vm1516_vm1, 1.0, %v2109_v52  ;;  %v2076_v8 = vsel %vm1514_vm2, 1.0, %v2109_v52  ;;  %v2075_v26 = vsel %vm1513_vm3, 1.0, %v2109_v52  ;;  %v2074_v63 = vsel %vm1512_vm4, 1.0, %v2109_v52 }
 0x4e0   : > { %v1578_v56 = vmul.f32 %v2076_v8, %v1562_v55  ;;  %v1577_v27 = vmul.f32 %v2075_v26, %v1561_v14  ;;  %v2073_v35 = vsel %vm1511_vm5, 1.0, %v2109_v52  ;;  %v1489_v55 = vadd.s32 %v3153_v10, %v1472_v31 }
 0x4e1   : > { %1785 = vmatmul.f32.gmra.mxu3 %v1721_v61  ;;  %v2077_v61 = vsel %vm1515_vm0, 1.0, %v2109_v52  ;;  %vm1507_vm9 = vcmp.lt.s32.totalorder %v1491_v1, 200  ;;  %v1469_v11 = vadd.s32 8, %v3147_v12  ;;  %v1488_v21 = vadd.s32 %v3153_v10, %v1471_v30 }
 0x4e2   : > { %v1594_v15 = vmul.f32 %v1578_v56, %v1578_v56  ;;  %v1593_v13 = vmul.f32 %v1577_v27, %v1577_v27  ;;  %vm1505_vm11 = vcmp.lt.s32.totalorder %v1489_v55, 200  ;;  %v1552_v27 = vsub.f32 %v2997_v57, %v2494_v60 }
 0x4e3   : > { %vm1504_vm12 = vcmp.lt.s32.totalorder %v1488_v21, 200  ;;  %v1550_v57 = vsub.f32 %v2971_v37, %v2480_v48  ;;  %vm1617_vm0 = vcmask 1040384  }
 0x525   : > { %v1460_v36 = vpop.f32.mrf.mxu0 }
 0x526   : > { %1708 = vmatmul.f32.gmra.mxu2 %v1460_v36  ;;  %v1563_v46 = vsub.f32 %v1460_v36, %v2562_v42  ;;  %v1475_v42 = vadd.s32 56, %v3147_v12  ;;  %v1473_v36 = vadd.s32 40, %v3147_v12 }
 0x528   : > { %v1579_v0 = vmul.f32 %v2077_v61, %v1563_v46  ;;  %v1492_v40 = vadd.s32 %v3153_v10, %v1475_v42  ;;  %v1576_v46 = vmul.f32 %v2074_v63, %v1560_v24  ;;  %v2072_v61 = vsel %vm1510_vm6, 1.0, %v2109_v52 }
 0x529   : > { %v1574_v42 = vmul.f32 %v2072_v61, %v1558_v25  ;;  %v1554_v24 = vsub.f32 %v3027_v22, %v2507_v34  ;;  %v1553_v63 = vsub.f32 %v3015_v6, %v2501_v2  ;;  %v1485_v34 = vadd.s32 %v3153_v10, %v3147_v12 }
 0x52a   : > { %v1595_v17 = vmul.f32 %v1579_v0, %v1579_v0  ;;  %vm1508_vm8 = vcmp.lt.s32.totalorder %v1492_v40, 200  ;;  %v1592_v32 = vmul.f32 %v1576_v46, %v1576_v46  ;;  %v1555_v0 = vsub.f32 %v3033_v62, %v2513_v7 }
 0x52b   : > { %v1688_v49 = vpop.f32.mrf.mxu2  ;;  %v2070_v8 = vsel %vm1508_vm8, 1.0, %v2109_v52  ;;  %v1590_v7 = vmul.f32 %v1574_v42, %v1574_v42  ;;  %v1486_v62 = vadd.s32 %v3153_v10, %v1469_v11  ;;  %v2067_v22 = vsel %vm1505_vm11, 1.0, %v2109_v52 }
 0x52c   : > { %v1689_v38 = vadd.f32 %v3069_v3, %v1688_v49  ;;  %v2066_v2 = vsel %vm1504_vm12, 1.0, %v2109_v52  ;;  %v1569_v1 = vmul.f32 %v2067_v22, %v1553_v63  ;;  %vm1501_vm15 = vcmp.lt.s32.totalorder %v1485_v34, 200 }
 0x52d   : > { %v1463_v29 = vpop.f32.mrf.mxu0  ;;  %vm1502_vm14 = vcmp.lt.s32.totalorder %v1486_v62, 200  ;;  %v1568_v25 = vmul.f32 %v2066_v2, %v1552_v27  ;;  %v2063_v61 = vsel %vm1501_vm15, 1.0, %v2109_v52 }
 0x52e   : > { %v1722_v58 = vmax.f32 %v1689_v38, 0.0  ;;  %v1564_v33 = vsub.f32 %v1463_v29, %v2574_v53  ;;  %1711 = vmatmul.f32.gmra.mxu2 %v1463_v29  ;;  %v1493_v53 = vadd.s32 %v3153_v10, %v1476_v47  ;;  %v1490_v47 = vadd.s32 %v3153_v10, %v1473_v36 }
 0x52f   : > { %v1584_v48 = vmul.f32 %v1568_v25, %v1568_v25 }
 0x530   : > { %v1580_v16 = vmul.f32 %v2078_v51, %v1564_v33  ;;  %1788 = vmatmul.f32.gmra.mxu3 %v1722_v58  ;;  %vm1509_vm7 = vcmp.lt.s32.totalorder %v1493_v53, 200  ;;  %v1575_v51 = vmul.f32 %v2073_v35, %v1559_v20  ;;  %v1556_v33 = vsub.f32 %v3061_v39, %v2519_v43 }
 0x531   : > { %v2071_v58 = vsel %vm1509_vm7, 1.0, %v2109_v52  ;;  %vm1506_vm10 = vcmp.lt.s32.totalorder %v1490_v47, 200  ;;  %v1487_v39 = vadd.s32 %v3153_v10, %v1470_v5  ;;  %v2069_v53 = vsel %vm1507_vm9, 1.0, %v2109_v52 }
 0x532   : > { %v1596_v23 = vmul.f32 %v1580_v16, %v1580_v16  ;;  %v1573_v16 = vmul.f32 %v2071_v58, %v1557_v44  ;;  %v1591_v43 = vmul.f32 %v1575_v51, %v1575_v51  ;;  %v1572_v56 = vmul.f32 %v2070_v8, %v1556_v33 }
 0x533   : > { %v1691_v28 = vpop.f32.mrf.mxu2  ;;  %v2068_v36 = vsel %vm1506_vm10, 1.0, %v2109_v52  ;;  %vm1503_vm13 = vcmp.lt.s32.totalorder %v1487_v39, 200  ;;  %v1585_v47 = vmul.f32 %v1569_v1, %v1569_v1 }
 0x534   : > { %v1692_v18 = vadd.f32 %v3069_v3, %v1691_v28  ;;  %v1768_v59 = vpop.f32.mrf.mxu3  ;;  %1597 = vmatpush.msra.mxu0 %v1596_v23  ;;  %v1571_v28 = vmul.f32 %v2069_v53, %v1555_v0  ;;  %v1589_v20 = vmul.f32 %v1573_v16, %v1573_v16 }
 0x535   : > { %v1769_v49 = vadd.f32 %v3187_v19, %v1768_v59  ;;  %v1588_v59 = vmul.f32 %v1572_v56, %v1572_v56 }
 0x536   : > { %v1723_v38 = vmax.f32 %v1692_v18, 0.0  ;;  %1598 = vmatpush.msra.mxu0 %v1595_v17  ;;  %v1570_v18 = vmul.f32 %v2068_v36, %v1554_v24  ;;  %v1551_v17 = vsub.f32 %v2982_v4, %v2487_v54  ;;  %v1587_v35 = vmul.f32 %v1571_v28, %v1571_v28  ;;  %v3266_v36 = vld [vmem:[%s3339_s15] ss:$0 sm:$0xff] }
 0x537   : > { %v1816_v29 = vmax.f32 %v1769_v49, 0.0  ;;  %v2065_v49 = vsel %vm1503_vm13, 1.0, %v2109_v52  ;;  %v2064_v54 = vsel %vm1502_vm14, 1.0, %v2109_v52 }
 0x538   : > { %1599 = vmatpush.msra.mxu0 %v1594_v15  ;;  %1791 = vmatmul.f32.gmra.mxu3 %v1723_v38  ;;  %v1586_v38 = vmul.f32 %v1570_v18, %v1570_v18  ;;  %v1549_v15 = vsub.f32 %v2960_v9, %v2473_v41  ;;  %v1567_v30 = vmul.f32 %v2065_v49, %v1551_v17 }
 0x539   : > { %1868 = vmatmul.f32.vlgmr.msrb.gmra.mxu1 %v1816_v29  ;;  %v1566_v29 = vmul.f32 %v2064_v54, %v1550_v57 }
 0x53a   : > { %1600 = vmatpush.msra.mxu0 %v1593_v13  ;;  %v1565_v37 = vmul.f32 %v2063_v61, %v1549_v15  ;;  %v1583_v51 = vmul.f32 %v1567_v30, %v1567_v30 }
 0x53b   : > { %v1694_v14 = vpop.f32.mrf.mxu2  ;;  %v1582_v41 = vmul.f32 %v1566_v29, %v1566_v29 }
 0x53c   : > { %v1695_v31 = vadd.f32 %v3069_v3, %v1694_v14  ;;  %v1771_v45 = vpop.f32.mrf.mxu3  ;;  %1601 = vmatpush.msra.mxu0 %v1592_v32  ;;  %v1581_v33 = vmul.f32 %v1565_v37, %v1565_v37 }
 0x53d   : > { %v1772_v26 = vadd.f32 %v3187_v19, %v1771_v45 }
 0x53e   : > { %v1724_v23 = vmax.f32 %v1695_v31, 0.0  ;;  %1602 = vmatpush.msra.mxu0 %v1591_v43 }
 0x53f   : > { %v1817_v40 = vmax.f32 %v1772_v26, 0.0 }
 0x540   : > { %1603 = vmatpush.msra.mxu0 %v1590_v7  ;;  %1794 = vmatmul.f32.gmra.mxu3 %v1724_v23 }
 0x541   : > { %1871 = vmatmul.f32.gmra.mxu1 %v1817_v40 }
 0x542   : > { %1604 = vmatpush.msra.mxu0 %v1589_v20 }
 0x543   : > { %v1697_v6 = vpop.f32.mrf.mxu2 }
 0x544   : > { %v1698_v12 = vadd.f32 %v3069_v3, %v1697_v6  ;;  %v1774_v10 = vpop.f32.mrf.mxu3  ;;  %1605 = vmatpush.msra.mxu0 %v1588_v59 }
 0x545   : > { %v1775_v60 = vadd.f32 %v3187_v19, %v1774_v10 }
 0x546   : > { %v1725_v46 = vmax.f32 %v1698_v12, 0.0  ;;  %1606 = vmatpush.msra.mxu0 %v1587_v35 }
 0x547   : > { %v1818_v4 = vmax.f32 %v1775_v60, 0.0 }
 0x548   : > { %1607 = vmatpush.msra.mxu0 %v1586_v38  ;;  %1797 = vmatmul.f32.gmra.mxu3 %v1725_v46 }
 0x549   : > { %1874 = vmatmul.f32.gmra.mxu1 %v1818_v4 }
 0x54a   : > { %1608 = vmatpush.msra.mxu0 %v1585_v47 }
 0x54c   : > { %v1777_v44 = vpop.f32.mrf.mxu3  ;;  %1609 = vmatpush.msra.mxu0 %v1584_v48 }
 0x54d   : > { %v1778_v13 = vadd.f32 %v3187_v19, %v1777_v44  ;;  %v1700_v5 = vpop.f32.mrf.mxu2 }
 0x54e   : > { %v1701_v55 = vadd.f32 %v3069_v3, %v1700_v5  ;;  %1610 = vmatpush.msra.mxu0 %v1583_v51 }
 0x54f   : > { %v1819_v9 = vmax.f32 %v1778_v13, 0.0 }
 0x550   : > { %v1726_v58 = vmax.f32 %v1701_v55, 0.0  ;;  %1611 = vmatpush.msra.mxu0 %v1582_v41 }
 0x551   : > { %1877 = vmatmul.f32.gmra.mxu1 %v1819_v9 }
 0x552   : > { %1612 = vmatpush.msra.mxu0 %v1581_v33  ;;  %1800 = vmatmul.f32.gmra.mxu3 %v1726_v58 }
 0x553   : > { %1613 = vmatmul.f32.vlgmr.msra.gmra.mxu0 %v2108_v50 }
 0x554   : > { %v1780_v52 = vpop.f32.mrf.mxu3 }
 0x555   : > { %v1781_v42 = vadd.f32 %v3187_v19, %v1780_v52  ;;  %v1703_v32 = vpop.f32.mrf.mxu2 }
 0x556   : > { %v1704_v11 = vadd.f32 %v3069_v3, %v1703_v32 }
 0x557   : > { %v1820_v21 = vmax.f32 %v1781_v42, 0.0 }
 0x558   : > { %v1727_v8 = vmax.f32 %v1704_v11, 0.0 }
 0x559   : > { %1880 = vmatmul.f32.gmra.mxu1 %v1820_v21 }
 0x55a   : > { %1803 = vmatmul.f32.gmra.mxu3 %v1727_v8 }
 0x55c   : > { %v1783_v14 = vpop.f32.mrf.mxu3 }
 0x55d   : > { %v1784_v0 = vadd.f32 %v3187_v19, %v1783_v14  ;;  %v1706_v16 = vpop.f32.mrf.mxu2 }
 0x55e   : > { %v1707_v31 = vadd.f32 %v3069_v3, %v1706_v16 }
 0x55f   : > { %v1821_v45 = vmax.f32 %v1784_v0, 0.0 }
 0x560   : > { %v1728_v43 = vmax.f32 %v1707_v31, 0.0 }
 0x561   : > { %1883 = vmatmul.f32.gmra.mxu1 %v1821_v45 }
 0x562   : > { %1806 = vmatmul.f32.gmra.mxu3 %v1728_v43 }
 0x564   : > { %v1786_v50 = vpop.f32.mrf.mxu3 }
 0x565   : > { %v1787_v39 = vadd.f32 %v3187_v19, %v1786_v50 }
 0x567   : > { %v1822_v53 = vmax.f32 %v1787_v39, 0.0 }
 0x569   : > { %1886 = vmatmul.f32.gmra.mxu1 %v1822_v53 }
 0x5a9   : > { %v1709_v26 = vpop.f32.mrf.mxu2 }
 0x5aa   : > { %v1710_v24 = vadd.f32 %v3069_v3, %v1709_v26 }
 0x5ac   : > { %v1729_v56 = vmax.f32 %v1710_v24, 0.0 }
 0x5ae   : > { %1809 = vmatmul.f32.gmra.mxu3 %v1729_v56 }
 0x5b1   : > { %v1712_v23 = vpop.f32.mrf.mxu2 }
 0x5b2   : > { %v1713_v7 = vadd.f32 %v3069_v3, %v1712_v23 }
 0x5b3   : > { %v1789_v62 = vpop.f32.mrf.mxu3 }
 0x5b4   : > { %v1730_v40 = vmax.f32 %v1713_v7, 0.0  ;;  %v1790_v63 = vadd.f32 %v3187_v19, %v1789_v62 }
 0x5b6   : > { %v1823_v28 = vmax.f32 %v1790_v63, 0.0  ;;  %v1869_v20 = vpop.f32.mrf.mxu1  ;;  %1812 = vmatmul.f32.gmra.mxu3 %v1730_v40 }
 0x5b7   : > { %v1870_v3 = vadd.f32 %v3266_v36, %v1869_v20 }
 0x5b8   : > { %1889 = vmatmul.f32.gmra.mxu1 %v1823_v28 }
 0x5b9   : > { %1917 = vst [vmem:[%s3274_s23] sm:$0xff] %v1870_v3 }
 0x5bb   : > { %v1792_v34 = vpop.f32.mrf.mxu3 }
 0x5bc   : > { %v1793_v22 = vadd.f32 %v3187_v19, %v1792_v34 }
 0x5be   : > { %v1824_v27 = vmax.f32 %v1793_v22, 0.0  ;;  %v1872_v18 = vpop.f32.mrf.mxu1 }
 0x5bf   : > { %v1873_v59 = vadd.f32 %v3266_v36, %v1872_v18 }
 0x5c0   : > { %1892 = vmatmul.f32.gmra.mxu1 %v1824_v27 }
 0x5c1   : > { %1918 = vst [vmem:[%s3274_s23 + $0x8] sm:$0xff] %v1873_v59 }
 0x5c3   : > { %v1795_v2 = vpop.f32.mrf.mxu3 }
 0x5c4   : > { %v1796_v6 = vadd.f32 %v3187_v19, %v1795_v2 }
 0x5c6   : > { %v1825_v17 = vmax.f32 %v1796_v6, 0.0  ;;  %v1875_v1 = vpop.f32.mrf.mxu1 }
 0x5c7   : > { %v1876_v12 = vadd.f32 %v3266_v36, %v1875_v1 }
 0x5c8   : > { %1895 = vmatmul.f32.gmra.mxu1 %v1825_v17 }
 0x5c9   : > { %1919 = vst [vmem:[%s3274_s23 + $0x10] sm:$0xff] %v1876_v12 }
 0x5cb   : > { %v1798_v10 = vpop.f32.mrf.mxu3 }
 0x5cc   : > { %v1799_v35 = vadd.f32 %v3187_v19, %v1798_v10 }
 0x5ce   : > { %v1826_v49 = vmax.f32 %v1799_v35, 0.0  ;;  %v1878_v60 = vpop.f32.mrf.mxu1 }
 0x5cf   : > { %v1879_v57 = vadd.f32 %v3266_v36, %v1878_v60 }
 0x5d0   : > { %1898 = vmatmul.f32.gmra.mxu1 %v1826_v49  ;;  %v1614_v25 = vpop.f32.mrf.mxu0 }
 0x5d1   : > { %1920 = vst [vmem:[%s3274_s23 + $0x18] sm:$0xff] %v1879_v57  ;;  %v1618_v46 = vsel %vm1617_vm0, %v1614_v25, 0.0 }
 0x5d2   : > { %1619 = vadd.xlane.f32.xlu1 %v1618_v46 }
 0x5d5   : > { %v1801_v38 = vpop.f32.mrf.mxu3 }
 0x5d6   : > { %v1802_v54 = vadd.f32 %v3187_v19, %v1801_v38  ;;  %v1881_v4 = vpop.f32.mrf.mxu1 }
 0x5d7   : > { %v1882_v15 = vadd.f32 %v3266_v36, %v1881_v4 }
 0x5d8   : > { %v1827_v30 = vmax.f32 %v1802_v54, 0.0 }
 0x5d9   : > { %1921 = vst [vmem:[%s3274_s23 + $0x20] sm:$0xff] %v1882_v15 }
 0x5da   : > { %1901 = vmatmul.f32.gmra.mxu1 %v1827_v30 }
 0x5dd   : > { %v1804_v47 = vpop.f32.mrf.mxu3 }
 0x5de   : > { %v1805_v61 = vadd.f32 %v3187_v19, %v1804_v47  ;;  %v1884_v29 = vpop.f32.mrf.mxu1 }
 0x5df   : > { %v1885_v48 = vadd.f32 %v3266_v36, %v1884_v29 }
 0x5e0   : > { %v1828_v37 = vmax.f32 %v1805_v61, 0.0 }
 0x5e1   : > { %1922 = vst [vmem:[%s3274_s23 + $0x28] sm:$0xff] %v1885_v48 }
 0x5e2   : > { %1904 = vmatmul.f32.gmra.mxu1 %v1828_v37 }
 0x5e5   : > { %v1807_v44 = vpop.f32.mrf.mxu3 }
 0x5e6   : > { %v1808_v51 = vadd.f32 %v3187_v19, %v1807_v44  ;;  %v1887_v13 = vpop.f32.mrf.mxu1 }
 0x5e7   : > { %v1888_v5 = vadd.f32 %v3266_v36, %v1887_v13 }
 0x5e8   : > { %v1829_v55 = vmax.f32 %v1808_v51, 0.0 }
 0x5e9   : > { %1923 = vst [vmem:[%s3274_s23 + $0x30] sm:$0xff] %v1888_v5 }
 0x5ea   : > { %1907 = vmatmul.f32.gmra.mxu1 %v1829_v55 }
 0x631   : > { %v1810_v41 = vpop.f32.mrf.mxu3 }
 0x632   : > { %v1811_v9 = vadd.f32 %v3187_v19, %v1810_v41 }
 0x634   : > { %v1830_v58 = vmax.f32 %v1811_v9, 0.0 }
 0x635   : > { %v1890_v33 = vpop.f32.mrf.mxu1 }
 0x636   : > { %v1891_v52 = vadd.f32 %v3266_v36, %v1890_v33  ;;  %1910 = vmatmul.f32.gmra.mxu1 %v1830_v58 }
 0x638   : > { %1924 = vst [vmem:[%s3274_s23 + $0x38] sm:$0xff] %v1891_v52 }
 0x639   : > { %v1813_v42 = vpop.f32.mrf.mxu3 }
 0x63a   : > { %v1814_v32 = vadd.f32 %v3187_v19, %v1813_v42 }
 0x63c   : > { %v1831_v11 = vmax.f32 %v1814_v32, 0.0 }
 0x63d   : > { %v1893_v21 = vpop.f32.mrf.mxu1 }
 0x63e   : > { %v1894_v8 = vadd.f32 %v3266_v36, %v1893_v21  ;;  %1913 = vmatmul.f32.gmra.mxu1 %v1831_v11 }
 0x640   : > { %1925 = vst [vmem:[%s3274_s23 + $0x40] sm:$0xff] %v1894_v8 }
 0x645   : > { %v1896_v14 = vpop.f32.mrf.mxu1  ;;  %v1620_v16 = vpop.xlane.xlu1 %1619 }
 0x646   : > { %v1897_v0 = vadd.f32 %v3266_v36, %v1896_v14  ;;  %v1621_v31 = vrot.slane %v1620_v16, 4 }
 0x648   : > { %1926 = vst [vmem:[%s3274_s23 + $0x48] sm:$0xff] %v1897_v0  ;;  %v1622_v43 = vadd.f32 %v1621_v31, %v1620_v16 }
 0x64a   : > { %v1623_v19 = vrot.slane %v1622_v43, 2 }
 0x64c   : > { %v1624_v39 = vadd.f32 %v1623_v19, %v1622_v43 }
 0x64d   : > { %v1899_v45 = vpop.f32.mrf.mxu1 }
 0x64e   : > { %v1900_v50 = vadd.f32 %v3266_v36, %v1899_v45  ;;  %v1625_v53 = vrot.slane %v1624_v39, 1 }
 0x650   : > { %1927 = vst [vmem:[%s3274_s23 + $0x50] sm:$0xff] %v1900_v50  ;;  %v1626_v26 = vadd.f32 %v1625_v53, %v1624_v39 }
 0x652   : > { %2081 = vpush %v1626_v26 }
 0x657   : > { %v1902_v24 = vpop.f32.mrf.mxu1 }
 0x658   : > { %v1903_v56 = vadd.f32 %v3266_v36, %v1902_v24 }
 0x65a   : > { %1928 = vst [vmem:[%s3274_s23 + $0x58] sm:$0xff] %v1903_v56 }
 0x65f   : > { %v1905_v23 = vpop.f32.mrf.mxu1 }
 0x660   : > { %v1906_v7 = vadd.f32 %v3266_v36, %v1905_v23 }
 0x662   : > { %1929 = vst [vmem:[%s3274_s23 + $0x60] sm:$0xff] %v1906_v7 }
 0x667   : > { %v1908_v62 = vpop.f32.mrf.mxu1 }
 0x668   : > { %v1909_v40 = vadd.f32 %v3266_v36, %v1908_v62 }
 0x66a   : > { %1930 = vst [vmem:[%s3274_s23 + $0x68] sm:$0xff] %v1909_v40 }
 0x683   : > { %s2082_s0 = spop %2081 }
 0x684   : > { %v1628_v63 = vstv %s2082_s0 }
 0x685   : > { %1629 = vst [vmem:[%s562_s29] sm:$0xff] %v1628_v63 }
 0x6b3   : > { %v1911_v28 = vpop.f32.mrf.mxu1 }
 0x6b4   : > { %v1912_v20 = vadd.f32 %v3266_v36, %v1911_v28 }
 0x6b6   : > { %1931 = vst [vmem:[%s3274_s23 + $0x70] sm:$0xff] %v1912_v20 }
 0x6bb   : > { %v1914_v3 = vpop.f32.mrf.mxu1 }
 0x6bc   : > { %v1915_v34 = vadd.f32 %v3266_v36, %v1914_v3 }
 0x6be   : > { %1932 = vst [vmem:[%s3274_s23 + $0x78] sm:$0xff] %v1915_v34 }
 0x6bf PF: > { %s28_s24 = sadd.s32 1, %s2106_s24  }
 0x6c0   : > { %p25_p5 = scmp.ge.s32.totalorder %s28_s24, 4  }
 0x6c2   :  { %27 = sbr.rel (!%p25_p5) target bundleno = 3 (0x3), region = 126 }

</bundles_post_ra>
